<compile_context>
chip_gen: v5e
topology: v5e:2x2
jax: 0.10.0
libtpu: 0.0.40
codegen_flags: <defaults>
</compile_context>

<pallas_src>
from functools import partial

import jax
import jax.numpy as jnp
from jax.experimental import pallas as pl
from jax.experimental.pallas import tpu as pltpu


def _face_attention2_kernel(face_ref, fc_ref, img_ref, label_ref, mem_ref,
                            mask_ref, w1f_ref, w1c_ref, w1i_ref, w1l_ref,
                            w1m_ref, b1_ref, w2_ref, alpha_ref, ctx_ref, *,
                            approx_recip):
    # face_ref:  (TB, S, Df)   compute dtype (bf16 on the fast path)
    # fc_ref:    (TB, S, Dfc)
    # img_ref:   (TB, S, Di)
    # label_ref: (TB, Dl)      sequence-invariant stream
    # mem_ref:   (TB, Dm)      sequence-invariant stream
    # mask_ref:  (TB, S)       f32 0/1
    # w1*_ref:   per-stream column blocks of linear1.weight^T, (D*, dim2)
    # b1_ref:    (1, dim2) f32
    # w2_ref:    (1, dim2) f32 (linear2.weight as a row)
    # alpha_ref: (TB, S)  f32 output slab
    # ctx_ref:   (TB, Df) f32 output slab
    eps = 1e-05

    TB, S, Df = face_ref.shape
    Dfc = fc_ref.shape[-1]
    Di = img_ref.shape[-1]
    dim2 = b1_ref.shape[-1]
    rows = TB * S

    face = face_ref[...]                                  # read once, reused

    # ---- linear1: per-token streams as one big (TB*S, D) x (D, dim2) matmul
    #      each, accumulated in f32 on the MXU.
    h = jnp.dot(face.reshape(rows, Df), w1f_ref[...],
                preferred_element_type=jnp.float32)
    h = h + jnp.dot(fc_ref[...].reshape(rows, Dfc), w1c_ref[...],
                    preferred_element_type=jnp.float32)
    h = h + jnp.dot(img_ref[...].reshape(rows, Di), w1i_ref[...],
                    preferred_element_type=jnp.float32)

    # Sequence-invariant label/memory contribution: computed once per batch
    # row and broadcast over S in VMEM (never replicated S-fold in HBM).
    h_lm = jnp.dot(label_ref[...], w1l_ref[...],
                   preferred_element_type=jnp.float32)
    h_lm = h_lm + jnp.dot(mem_ref[...], w1m_ref[...],
                          preferred_element_type=jnp.float32)

    h = h.reshape(TB, S, dim2) + h_lm[:, None, :] + b1_ref[...][None]
    h = jnp.tanh(h)

    # ---- linear2 (output width 1): VPU multiply + lane reduction, keeps the
    #      MXU / result FIFO free.
    e = jnp.sum(h * w2_ref[...][None], axis=-1)           # (TB, S), f32

    # ---- softmax over the sequence axis, then mask + renormalize
    #      (same two-step structure as the PyTorch module).
    m = jnp.max(e, axis=-1, keepdims=True)
    p = jnp.exp(e - m)
    s0 = jnp.sum(p, axis=-1, keepdims=True)
    if approx_recip:
        alpha = p * pl.reciprocal(s0, approx=True)
    else:
        alpha = p / s0
    alpha = alpha * mask_ref[...]
    s1 = jnp.sum(alpha, axis=-1, keepdims=True) + eps
    if approx_recip:
        alpha = alpha * pl.reciprocal(s1, approx=True)
    else:
        alpha = alpha / s1

    alpha_ref[...] = alpha.astype(alpha_ref.dtype)

    # ---- context = sum_s alpha[:, s] * face[:, s, :]  -> (TB, Df)
    ctx = jnp.sum(alpha[:, :, None] * face.astype(jnp.float32), axis=1)
    ctx_ref[...] = ctx.astype(ctx_ref.dtype)


def _pick_batch_tile(B, S, target_rows=512):
    """Pick TB: a divisor of B, sublane-aligned (multiple of 8 or == B),
    aiming for TB*S >= target_rows rows per MXU matmul while keeping >= 2
    grid steps (v7x megacore) when the target is out of reach."""
    divisors = [d for d in range(1, B + 1) if B % d == 0]
    aligned = [d for d in divisors if d % 8 == 0 or d == B] or divisors
    for d in aligned:
        if d * S >= target_rows:
            return d
    multi = [d for d in aligned if B // d >= 2]
    return (multi or aligned)[-1]


def face_attention2(fc_feat, img_feat, label_feat, memory_feat, face,
                    face_mask, w1, b1, w2, *, batch_tile=None,
                    compute_dtype=jnp.bfloat16):
    """
    fc_feat:     (B, S, Dfc)
    img_feat:    (B, S, Di)
    label_feat:  (B, Dl)
    memory_feat: (B, Dm)
    face:        (B, S, Df)
    face_mask:   (B, S)   (0/1)
    w1: (dim2, dim1+dim2)  -- linear1.weight (PyTorch layout)
    b1: (dim2,)            -- linear1.bias
    w2: (1, dim2)          -- linear2.weight
    Returns (alpha (B, S), context (B, Df)).
    """
    B, S, Df = face.shape
    Dfc = fc_feat.shape[-1]
    Di = img_feat.shape[-1]
    Dl = label_feat.shape[-1]
    Dm = memory_feat.shape[-1]
    dim2 = w1.shape[0]
    din = w1.shape[1]
    assert din == Df + Dfc + Di + Dl + Dm

    TB = batch_tile if batch_tile is not None else _pick_batch_tile(B, S)
    assert B % TB == 0, "batch tile must divide the batch size"

    cdt = jnp.dtype(compute_dtype)
    approx_recip = (cdt == jnp.dtype(jnp.bfloat16))

    # Split linear1.weight^T into per-stream K-blocks (concat order:
    # face, fc, img, label, memory) so the concatenated activation tensor is
    # never materialized in HBM.
    w1t = jnp.asarray(w1, jnp.float32).T                   # (Din, dim2)
    o0, o1, o2, o3 = Df, Df + Dfc, Df + Dfc + Di, Df + Dfc + Di + Dl
    w1t_face = w1t[:o0].astype(cdt)
    w1t_fc = w1t[o0:o1].astype(cdt)
    w1t_img = w1t[o1:o2].astype(cdt)
    w1t_lab = w1t[o2:o3].astype(cdt)
    w1t_mem = w1t[o3:].astype(cdt)
    b1r = jnp.asarray(b1, jnp.float32).reshape(1, dim2)
    w2r = jnp.asarray(w2, jnp.float32).reshape(1, dim2)

    mask2 = face_mask.reshape(B, S).astype(jnp.float32)

    rep3 = lambda b: (b, 0, 0)   # batch-tiled 3-D activations
    rep2 = lambda b: (b, 0)      # batch-tiled 2-D activations / outputs
    fixed = lambda b: (0, 0)     # batch-invariant weights

    alpha, context = pl.pallas_call(
        partial(_face_attention2_kernel, approx_recip=approx_recip),
        out_shape=(
            jax.ShapeDtypeStruct((B, S), jnp.float32),
            jax.ShapeDtypeStruct((B, Df), jnp.float32),
        ),
        grid_spec=pltpu.PrefetchScalarGridSpec(
            num_scalar_prefetch=0,
            grid=(B // TB,),
            in_specs=[
                pl.BlockSpec((TB, S, Df), rep3),      # face (read once)
                pl.BlockSpec((TB, S, Dfc), rep3),     # fc
                pl.BlockSpec((TB, S, Di), rep3),      # img
                pl.BlockSpec((TB, Dl), rep2),         # label (not replicated)
                pl.BlockSpec((TB, Dm), rep2),         # memory (not replicated)
                pl.BlockSpec((TB, S), rep2),          # mask
                pl.BlockSpec((Df, dim2), fixed),      # W1^T face block
                pl.BlockSpec((Dfc, dim2), fixed),     # W1^T fc block
                pl.BlockSpec((Di, dim2), fixed),      # W1^T img block
                pl.BlockSpec((Dl, dim2), fixed),      # W1^T label block
                pl.BlockSpec((Dm, dim2), fixed),      # W1^T memory block
                pl.BlockSpec((1, dim2), fixed),       # b1
                pl.BlockSpec((1, dim2), fixed),       # w2 row
            ],
            out_specs=[
                pl.BlockSpec((TB, S), rep2),          # alpha slab
                pl.BlockSpec((TB, Df), rep2),         # context slab
            ],
        ),
        compiler_params=pltpu.CompilerParams(
            dimension_semantics=("parallel",)),
    )(face.astype(cdt), fc_feat.astype(cdt), img_feat.astype(cdt),
      label_feat.astype(cdt), memory_feat.astype(cdt), mask2,
      w1t_face, w1t_fc, w1t_img, w1t_lab, w1t_mem, b1r, w2r)

    return alpha, context


def _reference(fc_feat, img_feat, label_feat, memory_feat, face, face_mask,
               w1, b1, w2):
    B, S, _ = face.shape
    label_rep = jnp.broadcast_to(label_feat[:, None, :],
                                 (B, S, label_feat.shape[-1]))
    memory_rep = jnp.broadcast_to(memory_feat[:, None, :],
                                  (B, S, memory_feat.shape[-1]))
    inputs = jnp.concatenate(
        (face, fc_feat, img_feat, label_rep, memory_rep), axis=2)
    h = jnp.tanh(inputs @ w1.T + b1)
    e = (h @ w2.T)[..., 0]                                  # (B, S)
    alpha = jax.nn.softmax(e, axis=1)
    alpha = alpha * face_mask.astype(jnp.float32)
    alpha = alpha / (alpha.sum(1, keepdims=True) + 1e-5)
    context = jnp.einsum("bs,bsd->bd", alpha, face)
    return alpha, context


if __name__ == "__main__":
    # Small shapes: dim1 = 128, dim2 = 32; five feature streams of width 32
    # each (face, fc, img, label, memory) -> Din = dim1 + dim2 = 160.
    # B=16, S=8 gives a batch tile of TB=8 -> 64-row matmuls and a 2-step
    # "parallel" grid (exercises the batch tiling and megacore sharding).
    B, S = 16, 8
    Df = Dfc = Di = Dl = Dm = 32
    dim1, dim2 = 128, 32
    din = dim1 + dim2

    key = jax.random.PRNGKey(0)
    ks = jax.random.split(key, 10)

    fc_feat = jax.random.normal(ks[0], (B, S, Dfc), jnp.float32)
    img_feat = jax.random.normal(ks[1], (B, S, Di), jnp.float32)
    label_feat = jax.random.normal(ks[2], (B, Dl), jnp.float32)
    memory_feat = jax.random.normal(ks[3], (B, Dm), jnp.float32)
    face = jax.random.normal(ks[4], (B, S, Df), jnp.float32)
    face_mask = (jax.random.uniform(ks[5], (B, S)) > 0.3).astype(jnp.float32)

    # Deterministic parameter init (xavier_normal_ for the two weight
    # matrices, uniform for linear1 bias as in PyTorch defaults).
    std1 = (2.0 / (din + dim2)) ** 0.5
    std2 = (2.0 / (dim2 + 1)) ** 0.5
    w1 = std1 * jax.random.normal(ks[6], (dim2, din), jnp.float32)
    bound = 1.0 / (din ** 0.5)
    b1 = jax.random.uniform(ks[7], (dim2,), jnp.float32, -bound, bound)
    w2 = std2 * jax.random.normal(ks[8], (1, dim2), jnp.float32)

    alpha_ref, context_ref = _reference(fc_feat, img_feat, label_feat,
                                        memory_feat, face, face_mask,
                                        w1, b1, w2)

    # f32 parity path (exact divisions inside the kernel): tight tolerance.
    a32, c32 = face_attention2(fc_feat, img_feat, label_feat, memory_feat,
                               face, face_mask, w1, b1, w2,
                               compute_dtype=jnp.float32)
    jax.block_until_ready((a32, c32))
    assert jnp.allclose(a32, alpha_ref, atol=1e-4, rtol=1e-4)
    assert jnp.allclose(c32, context_ref, atol=1e-4, rtol=1e-4)

    # bf16 fast path (default): bf16 MXU inputs, f32 accumulation + softmax.
    a16, c16 = face_attention2(fc_feat, img_feat, label_feat, memory_feat,
                               face, face_mask, w1, b1, w2)
    jax.block_until_ready((a16, c16))
    assert jnp.allclose(a16, alpha_ref, atol=5e-2, rtol=5e-2)
    assert jnp.allclose(c16, context_ref, atol=5e-2, rtol=5e-2)

    print("KERNEL_OK")
</pallas_src>

<mosaic_0001>
module attributes {stable_mosaic.version = 11 : i64} {
  func.func @_face_attention2_kernel(%arg0: i32, %arg1: memref<8x8x32xf32, #tpu.memory_space<vmem>>, %arg2: memref<8x8x32xf32, #tpu.memory_space<vmem>>, %arg3: memref<8x8x32xf32, #tpu.memory_space<vmem>>, %arg4: memref<8x32xf32, #tpu.memory_space<vmem>>, %arg5: memref<8x32xf32, #tpu.memory_space<vmem>>, %arg6: memref<8x8xf32, #tpu.memory_space<vmem>>, %arg7: memref<32x32xf32, #tpu.memory_space<vmem>>, %arg8: memref<32x32xf32, #tpu.memory_space<vmem>>, %arg9: memref<32x32xf32, #tpu.memory_space<vmem>>, %arg10: memref<32x32xf32, #tpu.memory_space<vmem>>, %arg11: memref<32x32xf32, #tpu.memory_space<vmem>>, %arg12: memref<1x32xf32, #tpu.memory_space<vmem>>, %arg13: memref<1x32xf32, #tpu.memory_space<vmem>>, %arg14: memref<8x8xf32, #tpu.memory_space<vmem>>, %arg15: memref<8x32xf32, #tpu.memory_space<vmem>>) attributes {dimension_semantics = [#tpu.dimension_semantics<parallel>], iteration_bounds = array<i64: 2>, scalar_prefetch = 0 : i64, scratch_operands = 0 : i64, tpu.core_type = #tpu.core_type<tc>, window_params = [{transform_indices = @transform_0, window_bounds = array<i64: 8, 8, 32>}, {transform_indices = @transform_1, window_bounds = array<i64: 8, 8, 32>}, {transform_indices = @transform_2, window_bounds = array<i64: 8, 8, 32>}, {transform_indices = @transform_3, window_bounds = array<i64: 8, 32>}, {transform_indices = @transform_4, window_bounds = array<i64: 8, 32>}, {transform_indices = @transform_5, window_bounds = array<i64: 8, 8>}, {pipeline_mode = #tpu.pipeline_mode<synchronous>, transform_indices = @transform_6, window_bounds = array<i64: 32, 32>}, {pipeline_mode = #tpu.pipeline_mode<synchronous>, transform_indices = @transform_7, window_bounds = array<i64: 32, 32>}, {pipeline_mode = #tpu.pipeline_mode<synchronous>, transform_indices = @transform_8, window_bounds = array<i64: 32, 32>}, {pipeline_mode = #tpu.pipeline_mode<synchronous>, transform_indices = @transform_9, window_bounds = array<i64: 32, 32>}, {pipeline_mode = #tpu.pipeline_mode<synchronous>, transform_indices = @transform_10, window_bounds = array<i64: 32, 32>}, {pipeline_mode = #tpu.pipeline_mode<synchronous>, transform_indices = @transform_11, window_bounds = array<i64: 1, 32>}, {pipeline_mode = #tpu.pipeline_mode<synchronous>, transform_indices = @transform_12, window_bounds = array<i64: 1, 32>}, {transform_indices = @transform_13, window_bounds = array<i64: 8, 8>}, {transform_indices = @transform_14, window_bounds = array<i64: 8, 32>}]} {
    %c0 = arith.constant 0 : index
    %c0_0 = arith.constant 0 : index
    %c0_1 = arith.constant 0 : index
    %0 = vector.load %arg1[%c0, %c0_0, %c0_1] : memref<8x8x32xf32, #tpu.memory_space<vmem>>, vector<8x8x32xf32>
    %1 = vector.shape_cast %0 : vector<8x8x32xf32> to vector<64x32xf32>
    %c0_2 = arith.constant 0 : index
    %c0_3 = arith.constant 0 : index
    %2 = vector.load %arg7[%c0_2, %c0_3] : memref<32x32xf32, #tpu.memory_space<vmem>>, vector<32x32xf32>
    %cst = arith.constant dense<0.000000e+00> : vector<64x32xf32>
    %3 = tpu.matmul %1, %2, %cst {dimension_numbers = #tpu.dot_dimension_numbers<[1], [0], [0], [1], [0, 0, 1, 1], [], []>} : vector<64x32xf32>, vector<32x32xf32>, vector<64x32xf32> -> vector<64x32xf32>
    %c0_4 = arith.constant 0 : index
    %c0_5 = arith.constant 0 : index
    %c0_6 = arith.constant 0 : index
    %4 = vector.load %arg2[%c0_4, %c0_5, %c0_6] : memref<8x8x32xf32, #tpu.memory_space<vmem>>, vector<8x8x32xf32>
    %5 = vector.shape_cast %4 : vector<8x8x32xf32> to vector<64x32xf32>
    %c0_7 = arith.constant 0 : index
    %c0_8 = arith.constant 0 : index
    %6 = vector.load %arg8[%c0_7, %c0_8] : memref<32x32xf32, #tpu.memory_space<vmem>>, vector<32x32xf32>
    %cst_9 = arith.constant dense<0.000000e+00> : vector<64x32xf32>
    %7 = tpu.matmul %5, %6, %cst_9 {dimension_numbers = #tpu.dot_dimension_numbers<[1], [0], [0], [1], [0, 0, 1, 1], [], []>} : vector<64x32xf32>, vector<32x32xf32>, vector<64x32xf32> -> vector<64x32xf32>
    %8 = arith.addf %3, %7 : vector<64x32xf32>
    %c0_10 = arith.constant 0 : index
    %c0_11 = arith.constant 0 : index
    %c0_12 = arith.constant 0 : index
    %9 = vector.load %arg3[%c0_10, %c0_11, %c0_12] : memref<8x8x32xf32, #tpu.memory_space<vmem>>, vector<8x8x32xf32>
    %10 = vector.shape_cast %9 : vector<8x8x32xf32> to vector<64x32xf32>
    %c0_13 = arith.constant 0 : index
    %c0_14 = arith.constant 0 : index
    %11 = vector.load %arg9[%c0_13, %c0_14] : memref<32x32xf32, #tpu.memory_space<vmem>>, vector<32x32xf32>
    %cst_15 = arith.constant dense<0.000000e+00> : vector<64x32xf32>
    %12 = tpu.matmul %10, %11, %cst_15 {dimension_numbers = #tpu.dot_dimension_numbers<[1], [0], [0], [1], [0, 0, 1, 1], [], []>} : vector<64x32xf32>, vector<32x32xf32>, vector<64x32xf32> -> vector<64x32xf32>
    %13 = arith.addf %8, %12 : vector<64x32xf32>
    %c0_16 = arith.constant 0 : index
    %c0_17 = arith.constant 0 : index
    %14 = vector.load %arg4[%c0_16, %c0_17] : memref<8x32xf32, #tpu.memory_space<vmem>>, vector<8x32xf32>
    %c0_18 = arith.constant 0 : index
    %c0_19 = arith.constant 0 : index
    %15 = vector.load %arg10[%c0_18, %c0_19] : memref<32x32xf32, #tpu.memory_space<vmem>>, vector<32x32xf32>
    %cst_20 = arith.constant dense<0.000000e+00> : vector<8x32xf32>
    %16 = tpu.matmul %14, %15, %cst_20 {dimension_numbers = #tpu.dot_dimension_numbers<[1], [0], [0], [1], [0, 0, 1, 1], [], []>} : vector<8x32xf32>, vector<32x32xf32>, vector<8x32xf32> -> vector<8x32xf32>
    %c0_21 = arith.constant 0 : index
    %c0_22 = arith.constant 0 : index
    %17 = vector.load %arg5[%c0_21, %c0_22] : memref<8x32xf32, #tpu.memory_space<vmem>>, vector<8x32xf32>
    %c0_23 = arith.constant 0 : index
    %c0_24 = arith.constant 0 : index
    %18 = vector.load %arg11[%c0_23, %c0_24] : memref<32x32xf32, #tpu.memory_space<vmem>>, vector<32x32xf32>
    %cst_25 = arith.constant dense<0.000000e+00> : vector<8x32xf32>
    %19 = tpu.matmul %17, %18, %cst_25 {dimension_numbers = #tpu.dot_dimension_numbers<[1], [0], [0], [1], [0, 0, 1, 1], [], []>} : vector<8x32xf32>, vector<32x32xf32>, vector<8x32xf32> -> vector<8x32xf32>
    %20 = arith.addf %16, %19 : vector<8x32xf32>
    %21 = vector.shape_cast %13 : vector<64x32xf32> to vector<8x8x32xf32>
    %22 = vector.shape_cast %20 : vector<8x32xf32> to vector<8x1x32xf32>
    %23 = vector.broadcast %22 : vector<8x1x32xf32> to vector<8x8x32xf32>
    %24 = arith.addf %21, %23 : vector<8x8x32xf32>
    %c0_26 = arith.constant 0 : index
    %c0_27 = arith.constant 0 : index
    %25 = vector.load %arg12[%c0_26, %c0_27] : memref<1x32xf32, #tpu.memory_space<vmem>>, vector<1x32xf32>
    %26 = vector.shape_cast %25 : vector<1x32xf32> to vector<1x1x32xf32>
    %27 = vector.broadcast %26 : vector<1x1x32xf32> to vector<8x8x32xf32>
    %28 = arith.addf %24, %27 : vector<8x8x32xf32>
    %29 = math.tanh %28 : vector<8x8x32xf32>
    %c0_28 = arith.constant 0 : index
    %c0_29 = arith.constant 0 : index
    %30 = vector.load %arg13[%c0_28, %c0_29] : memref<1x32xf32, #tpu.memory_space<vmem>>, vector<1x32xf32>
    %31 = vector.shape_cast %30 : vector<1x32xf32> to vector<1x1x32xf32>
    %32 = vector.broadcast %31 : vector<1x1x32xf32> to vector<8x8x32xf32>
    %33 = arith.mulf %29, %32 : vector<8x8x32xf32>
    %cst_30 = arith.constant dense<0.000000e+00> : vector<8x8xf32>
    %34 = vector.multi_reduction <add>, %33, %cst_30 [2] : vector<8x8x32xf32> to vector<8x8xf32>
    %cst_31 = arith.constant dense<0xFF800000> : vector<8xf32>
    %35 = vector.multi_reduction <maximumf>, %34, %cst_31 [1] : vector<8x8xf32> to vector<8xf32>
    %36 = vector.shape_cast %35 : vector<8xf32> to vector<8x1xf32>
    %37 = vector.broadcast %36 : vector<8x1xf32> to vector<8x8xf32>
    %38 = arith.subf %34, %37 : vector<8x8xf32>
    %39 = math.exp %38 : vector<8x8xf32>
    %cst_32 = arith.constant dense<0.000000e+00> : vector<8xf32>
    %40 = vector.multi_reduction <add>, %39, %cst_32 [1] : vector<8x8xf32> to vector<8xf32>
    %41 = vector.shape_cast %40 : vector<8xf32> to vector<8x1xf32>
    %42 = vector.broadcast %41 : vector<8x1xf32> to vector<8x8xf32>
    %43 = arith.divf %39, %42 : vector<8x8xf32>
    %c0_33 = arith.constant 0 : index
    %c0_34 = arith.constant 0 : index
    %44 = vector.load %arg6[%c0_33, %c0_34] : memref<8x8xf32, #tpu.memory_space<vmem>>, vector<8x8xf32>
    %45 = arith.mulf %43, %44 : vector<8x8xf32>
    %cst_35 = arith.constant dense<0.000000e+00> : vector<8xf32>
    %46 = vector.multi_reduction <add>, %45, %cst_35 [1] : vector<8x8xf32> to vector<8xf32>
    %47 = vector.shape_cast %46 : vector<8xf32> to vector<8x1xf32>
    %cst_36 = arith.constant 9.99999974E-6 : f32
    %48 = vector.broadcast %cst_36 : f32 to vector<8x1xf32>
    %49 = arith.addf %47, %48 : vector<8x1xf32>
    %50 = vector.broadcast %49 : vector<8x1xf32> to vector<8x8xf32>
    %51 = arith.divf %45, %50 : vector<8x8xf32>
    %c0_37 = arith.constant 0 : index
    %c0_38 = arith.constant 0 : index
    %52 = vector.load %arg14[%c0_37, %c0_38] : memref<8x8xf32, #tpu.memory_space<vmem>>, vector<8x8xf32>
    tpu.vector_store %arg14[%c0_37, %c0_38], %51 {strides = array<i32>} : memref<8x8xf32, #tpu.memory_space<vmem>>, vector<8x8xf32>,
    %53 = vector.shape_cast %51 : vector<8x8xf32> to vector<8x8x1xf32>
    %54 = vector.broadcast %53 : vector<8x8x1xf32> to vector<8x8x32xf32>
    %55 = arith.mulf %54, %0 : vector<8x8x32xf32>
    %cst_39 = arith.constant dense<0.000000e+00> : vector<8x32xf32>
    %56 = vector.multi_reduction <add>, %55, %cst_39 [1] : vector<8x8x32xf32> to vector<8x32xf32>
    %c0_40 = arith.constant 0 : index
    %c0_41 = arith.constant 0 : index
    %57 = vector.load %arg15[%c0_40, %c0_41] : memref<8x32xf32, #tpu.memory_space<vmem>>, vector<8x32xf32>
    tpu.vector_store %arg15[%c0_40, %c0_41], %56 {strides = array<i32>} : memref<8x32xf32, #tpu.memory_space<vmem>>, vector<8x32xf32>,
    return
  }
  func.func @transform_0(%arg0: i32) -> (i32, i32, i32) {
    %c0_i32 = arith.constant 0 : i32
    %c0_i32_0 = arith.constant 0 : i32
    %c0_i32_1 = arith.constant 0 : i32
    return %arg0, %c0_i32, %c0_i32_0 : i32, i32, i32
  }
  func.func @transform_1(%arg0: i32) -> (i32, i32, i32) {
    %c0_i32 = arith.constant 0 : i32
    %c0_i32_0 = arith.constant 0 : i32
    %c0_i32_1 = arith.constant 0 : i32
    return %arg0, %c0_i32, %c0_i32_0 : i32, i32, i32
  }
  func.func @transform_2(%arg0: i32) -> (i32, i32, i32) {
    %c0_i32 = arith.constant 0 : i32
    %c0_i32_0 = arith.constant 0 : i32
    %c0_i32_1 = arith.constant 0 : i32
    return %arg0, %c0_i32, %c0_i32_0 : i32, i32, i32
  }
  func.func @transform_3(%arg0: i32) -> (i32, i32) {
    %c0_i32 = arith.constant 0 : i32
    %c0_i32_0 = arith.constant 0 : i32
    return %arg0, %c0_i32 : i32, i32
  }
  func.func @transform_4(%arg0: i32) -> (i32, i32) {
    %c0_i32 = arith.constant 0 : i32
    %c0_i32_0 = arith.constant 0 : i32
    return %arg0, %c0_i32 : i32, i32
  }
  func.func @transform_5(%arg0: i32) -> (i32, i32) {
    %c0_i32 = arith.constant 0 : i32
    %c0_i32_0 = arith.constant 0 : i32
    return %arg0, %c0_i32 : i32, i32
  }
  func.func @transform_6(%arg0: i32) -> (i32, i32) {
    %c0_i32 = arith.constant 0 : i32
    %c0_i32_0 = arith.constant 0 : i32
    %c0_i32_1 = arith.constant 0 : i32
    return %c0_i32, %c0_i32_0 : i32, i32
  }
  func.func @transform_7(%arg0: i32) -> (i32, i32) {
    %c0_i32 = arith.constant 0 : i32
    %c0_i32_0 = arith.constant 0 : i32
    %c0_i32_1 = arith.constant 0 : i32
    return %c0_i32, %c0_i32_0 : i32, i32
  }
  func.func @transform_8(%arg0: i32) -> (i32, i32) {
    %c0_i32 = arith.constant 0 : i32
    %c0_i32_0 = arith.constant 0 : i32
    %c0_i32_1 = arith.constant 0 : i32
    return %c0_i32, %c0_i32_0 : i32, i32
  }
  func.func @transform_9(%arg0: i32) -> (i32, i32) {
    %c0_i32 = arith.constant 0 : i32
    %c0_i32_0 = arith.constant 0 : i32
    %c0_i32_1 = arith.constant 0 : i32
    return %c0_i32, %c0_i32_0 : i32, i32
  }
  func.func @transform_10(%arg0: i32) -> (i32, i32) {
    %c0_i32 = arith.constant 0 : i32
    %c0_i32_0 = arith.constant 0 : i32
    %c0_i32_1 = arith.constant 0 : i32
    return %c0_i32, %c0_i32_0 : i32, i32
  }
  func.func @transform_11(%arg0: i32) -> (i32, i32) {
    %c0_i32 = arith.constant 0 : i32
    %c0_i32_0 = arith.constant 0 : i32
    %c0_i32_1 = arith.constant 0 : i32
    return %c0_i32, %c0_i32_0 : i32, i32
  }
  func.func @transform_12(%arg0: i32) -> (i32, i32) {
    %c0_i32 = arith.constant 0 : i32
    %c0_i32_0 = arith.constant 0 : i32
    %c0_i32_1 = arith.constant 0 : i32
    return %c0_i32, %c0_i32_0 : i32, i32
  }
  func.func @transform_13(%arg0: i32) -> (i32, i32) {
    %c0_i32 = arith.constant 0 : i32
    %c0_i32_0 = arith.constant 0 : i32
    return %arg0, %c0_i32 : i32, i32
  }
  func.func @transform_14(%arg0: i32) -> (i32, i32) {
    %c0_i32 = arith.constant 0 : i32
    %c0_i32_0 = arith.constant 0 : i32
    return %arg0, %c0_i32 : i32, i32
  }
}

</mosaic_0001>

<bundles_post_ra>
// kernel: tpu_custom_call.1
= control target key start
LH: loop header
LB: loop body
LE: loop exit
PB: predicated region body
PF: predicated region fallthrough
CT: control target
= control target key end

     0   :  { %s3531_s0 = inlined_call_operand.hbm [shape: f32[16,8,32], index: 0, kind: input, shape index: {}]   ;;  %s3532_s1 = inlined_call_operand.hbm [shape: f32[16,8,32], index: 1, kind: input, shape index: {}]   ;;  %s3533_s2 = inlined_call_operand.hbm [shape: f32[16,8,32], index: 2, kind: input, shape index: {}]   ;;  %s3534_s3 = inlined_call_operand.hbm [shape: f32[16,32], index: 3, kind: input, shape index: {}]   ;;  %s3535_s4 = inlined_call_operand.hbm [shape: f32[16,32], index: 4, kind: input, shape index: {}]   ;;  %s3536_s5 = inlined_call_operand.vmem [shape: f32[16,8], index: 5, kind: input, shape index: {}]   ;;  %s3537_s6 = inlined_call_operand.hbm [shape: f32[32,32], index: 6, kind: input, shape index: {}]   ;;  %s3538_s7 = inlined_call_operand.hbm [shape: f32[32,32], index: 7, kind: input, shape index: {}]   ;;  %s3539_s8 = inlined_call_operand.hbm [shape: f32[32,32], index: 8, kind: input, shape index: {}]   ;;  %s3540_s9 = inlined_call_operand.vmem [shape: f32[32,32], index: 9, kind: input, shape index: {}]   ;;  %s3541_s10 = inlined_call_operand.hbm [shape: f32[32,32], index: 10, kind: input, shape index: {}]   ;;  %s3542_s11 = inlined_call_operand.vmem [shape: f32[1,32], index: 11, kind: input, shape index: {}]   ;;  %s3543_s12 = inlined_call_operand.vmem [shape: f32[1,32], index: 12, kind: input, shape index: {}]   ;;  %s3544_s13 = inlined_call_operand.vmem [shape: f32[16,8], index: 13, kind: output, shape index: {0}]   ;;  %s3545_s14 = inlined_call_operand.hbm [shape: f32[16,32], index: 14, kind: output, shape index: {1}]  }
   0x1   :  { %3570 = sst [smem:[#allocation33_spill]] %s3532_s1 }
   0x2   :  { %3571 = sst [smem:[#allocation34_spill]] %s3534_s3 }
   0x3   :  { %3572 = sst [smem:[#allocation35_spill]] %s3536_s5 }
   0x4   :  { %3573 = sst [smem:[#allocation36_spill]] %s3537_s6 }
   0x5   :  { %3574 = sst [smem:[#allocation37_spill]] %s3539_s8 }
   0x6   :  { %3575 = sst [smem:[#allocation38_spill]] %s3540_s9 }
   0x7   :  { %3576 = sst [smem:[#allocation39_spill]] %s3542_s11 }
   0x8   :  { %3577 = sst [smem:[#allocation40_spill]] %s3543_s12 }
   0x9   :  { %3578 = sst [smem:[#allocation41_spill]] %s3544_s13 }
   0xa   :  { %3579 = sst [smem:[#allocation42_spill]] %s3545_s14 }
   0xb   :  { %20 = vsyncpa [#allocation3], 0 }
   0xc   :  { %22 = vsyncpa [#allocation3 + $0x1], 0 }
   0xd   :  { %23 = vsyncpa [#allocation6], 0 }
   0xe   :  { %25 = vsyncpa [#allocation6 + $0x1], 0 }
   0xf   :  { %26 = vsyncpa [#allocation9], 0 }
  0x10   :  { %28 = vsyncpa [#allocation9 + $0x1], 0 }
  0x11   :  { %29 = vsyncpa [#allocation12], 0 }
  0x12   :  { %30 = vsyncpa [#allocation15], 0 }
  0x13   :  { %31 = vsyncpa [#allocation4], 0 }
  0x14   :  { %33 = vsyncpa [#allocation4 + $0x1], 0  ;;  %s2750_s29 = smov 0   ;;  %s2752_s30 = smov 0  }
  0x15   :  { %s2754_s15 = smov 0   ;;  %s2756_s16 = smov 0  }
  0x16 LB: > { %3580 = sst [smem:[#allocation24_spill]] %s2654_s29  ;;  %s2771_s17 = sadd.s32 4294967295, %s2666_s16   ;;  %s2666_s16 = sphi %s2756_s16, %s3646_s16   ;;  %s2662_s15 = sphi %s2754_s15, %s3649_s15   ;;  %s2658_s30 = sphi %s2752_s30, %s3648_s30   ;;  %s2654_s29 = sphi %s2750_s29, %s3647_s29  }
  0x17   : > { %3581 = sst [smem:[#allocation25_spill]] %s2658_s30  ;;  %s2045_s18 = sadd.s32 4294967294, %s2666_s16  }
  0x18   : > { %3582 = sst [smem:[#allocation26_spill]] %s2662_s15  ;;  %p59_p0 = scmp.ne.s32.totalorder %s2658_s30, %s2654_s29 }
  0x19   : > { %3583 = sst [smem:[#allocation27_spill]] %s2771_s17  ;;  %p3559_p1 = scmp.eq.s32.totalorder %s2771_s17, 0 }
  0x1a   : > { %p386_p2 = scmp.eq.s32.totalorder %s2771_s17, 1  ;;  %p392_p3 = scmp.eq.s32.totalorder %s2045_s18, 1 }
  0x1b   : > { %p2780_p4 = por %p3559_p1, %p59_p0  ;;  %p2046_p5 = scmp.ge.s32.totalorder %s2666_s16, 1 }
  0x1c   : > { %p2785_p6 = por %p392_p3, %p59_p0  ;;  %p399_p7 = scmp.lt.s32.totalorder %s2666_s16, 3 }
  0x1d   : > { %s3584_s19 = scalar_select %p2780_p4, 1, 0 }
  0x1e   : > { %s3586_s20 = scalar_select %p2785_p6, 1, 0 }
  0x1f   : > { %3585 = sst [smem:[#allocation28_spill]] %s3584_s19  ;;  %p2793_p8 = pnand %p2046_p5, %p399_p7 }
  0x20   : > { %3587 = sst [smem:[#allocation29_spill]] %s3586_s20  ;;  %s2668_s25 = smov [#allocation11]  }
  0x21   : > { %s3588_s6 = sld [smem:[#allocation36_spill]]  ;;  %p2151_p9 = pneg %p2793_p8 }
  0x22   : > { %s412_s26 = sshll.u32 %s2668_s25, 4  ;;  %s3591_s8 = sld [smem:[#allocation37_spill]]  ;;  %s413_s26 = int_to_ptr.vmem [resolvable:$true] %s412_s26 }
  0x23   : > { %p2801_p10 = pnand %p2151_p9, %p3559_p1  ;;  %s3547_s22 = smov 128  }
  0x24   : > { %s3549_s25 = smov 8   ;;  %s2820_s28 = sadd.s32 1, %s2666_s16  }
  0x25   : > { %3592 = sst [smem:[#allocation30_spill]] %s2820_s28  ;;  %s46_s18 = sadd.s32 1, %s2662_s15 }
  0x26   : > { %p53_p12 = scmp.ne.s32.totalorder %s2662_s15, %s2658_s30  ;;  %p54_p0 = scmp.eq.s32.totalorder %s2666_s16, 0 }
  0x27   : > { %s410_s23 = sshll.u32 %s3588_s6, 4  ;;  %s2671_s6 = smov [#allocation14]   ;;  %s411_s23 = int_to_ptr.hbm [resolvable:$true] %s410_s23 }
  0x28   : > { %s438_s21 = sshll.u32 %s3591_s8, 4  ;;  %s440_s20 = sshll.u32 %s2671_s6, 4  ;;  %s439_s21 = int_to_ptr.hbm [resolvable:$true] %s438_s21  ;;  %s441_s20 = int_to_ptr.vmem [resolvable:$true] %s440_s20 }
  0x29   : > { %2154 = dma.hbm_to_vmem [thread:$0]  (!%p2801_p10), %s411_s23, 512, %s413_s26, [#allocation12], %s3547_s22, %s3547_s22, %s3549_s25  }
  0x2a   : > { %2160 = dma.hbm_to_vmem [thread:$0]  (!%p2801_p10), %s439_s21, 512, %s441_s20, [#allocation15], %s3547_s22, %s3547_s22, %s3549_s25  }
  0x2b   : > { %s43_s8 = ssub.s32 %s2666_s16, %s2820_s28  ;;  %p2830_p3 = por %p386_p2, %p53_p12 }
  0x2c   : > { %p44_p13 = scmp.eq.s32.totalorder %s43_s8, 0  ;;  %p2188_p5 = scmp.lt.s32.totalorder %s2666_s16, 2 }
  0x2d   : > { %s3593_s23 = scalar_select %p2830_p3, 1, 0 }
  0x2e   : > { %s2836_s6 = scalar_select %p44_p13, %s2662_s15, %s46_s18  }
  0x2f   : > { %3594 = sst [smem:[#allocation31_spill]] %s3593_s23  ;;  %p55_p7 = por %p54_p0, %p53_p12 }
  0x30   : > { %3595 = sst [smem:[#allocation32_spill]] %s2836_s6  ;;  %s2839_s26 = sand.u32 1, %s2662_s15  }
  0x31   : > { %s2842_s20 = sshll.u32 %s2839_s26, 6  ;;  %s2845_s21 = sshll.u32 %s2666_s16, 6 }
  0x32   : > { %p2847_p9 = pnand %p2188_p5, %p55_p7  ;;  %s3558_s22 = sand.u32 1, %s2666_s16  }
  0x33   : > { %s3597_s1 = sld [smem:[#allocation33_spill]]  ;;  %s503_s15 = scalar_lea.vmem [#allocation5], %s2842_s20 }
  0x34   : > { %s511_s29 = sshll.u32 %s503_s15, 4  ;;  %s2859_s23 = scalar_lea.sflag [#allocation6], %s3558_s22  ;;  %s512_s29 = int_to_ptr.vmem [resolvable:$true] %s511_s29 }
  0x35   : > { %p2863_p12 = pneg %p2847_p9 }
  0x39   : > { %s508_s18 = scalar_lea.hbm %s3597_s1, %s2845_s21  ;;  %s2381_s28 = scalar_lea.hbm %s3597_s1, 128 }
  0x3a   : > { %s509_s6 = sshll.u32 %s508_s18, 4  ;;  %s510_s6 = int_to_ptr.hbm [resolvable:$true] %s509_s6 }
  0x3b   : > { %s2374_s14 = sshra.s32 %s510_s6, 4  ;;  %s2375_s14 = int_to_ptr.hbm [resolvable:$true] %s2374_s14 }
  0x3c   : > { %s2376_s13 = scalar_lea.hbm %s2375_s14, 64  ;;  %p2382_p5 = scmp.lt.s32.totalorder %s2375_s14, %s3597_s1 }
  0x3d   : > { %p2377_p2 = scmp.ne.s32.totalorder %s2375_s14, %s2376_s13  ;;  %p2383_p7 = scmp.lt.s32.totalorder %s2381_s28, %s2376_s13 }
  0x3f   : > { %p2379_p13 = pnand %p2863_p12, %p2377_p2  ;;  %p2384_p11 = por %p2383_p7, %p2382_p5 }
  0x41   : > { %p2380_p0 = pneg %p2379_p13 }
  0x43   : > { %p2385_p1 = pnand %p2384_p11, %p2380_p0 }
  0x45   : > { %2388 = shalt.err (!%p2385_p1)
}
  0x46   : > { %s3599_s12 = smov 8   ;;  %s3600_s11 = smov 128  }
  0x47   : > { %2170 = dma.hbm_to_vmem [thread:$0]  (!%p2847_p9), %s510_s6, 1024, %s512_s29, %s2859_s23, %s3600_s11, %s3600_s11, %s3599_s12  }
  0x48   : > { %s3566_s25 = sshll.u32 %s2839_s26, 3  ;;  %s2062_s15 = sshll.u32 %s2666_s16, 3 }
  0x49   : > { %s3601_s3 = sld [smem:[#allocation34_spill]]  ;;  %s547_s28 = scalar_lea.vmem [#allocation8], %s3566_s25 }
  0x4a   : > { %s555_s18 = sshll.u32 %s547_s28, 4  ;;  %s3602_s9 = sand.u32 1, %s2666_s16   ;;  %s556_s18 = int_to_ptr.vmem [resolvable:$true] %s555_s18 }
  0x4b   : > { %s2890_s17 = scalar_lea.sflag [#allocation9], %s3602_s9 }
  0x4f   : > { %s551_s13 = scalar_lea.hbm %s3601_s3, %s2062_s15  ;;  %s2411_s22 = scalar_lea.hbm %s3601_s3, 16 }
  0x50   : > { %s553_s1 = sshll.u32 %s551_s13, 4  ;;  %s554_s1 = int_to_ptr.hbm [resolvable:$true] %s553_s1 }
  0x51   : > { %s2404_s19 = sshra.s32 %s554_s1, 4  ;;  %s2405_s19 = int_to_ptr.hbm [resolvable:$true] %s2404_s19 }
  0x52   : > { %s2406_s30 = scalar_lea.hbm %s2405_s19, 8  ;;  %p2412_p13 = scmp.lt.s32.totalorder %s2405_s19, %s3601_s3 }
  0x53   : > { %p2407_p1 = scmp.ne.s32.totalorder %s2405_s19, %s2406_s30  ;;  %p2413_p0 = scmp.lt.s32.totalorder %s2411_s22, %s2406_s30 }
  0x55   : > { %p2409_p11 = pnand %p2407_p1, %p2863_p12  ;;  %p2414_p5 = por %p2413_p0, %p2412_p13 }
  0x57   : > { %p2410_p2 = pneg %p2409_p11 }
  0x59   : > { %p2415_p7 = pnand %p2414_p5, %p2410_p2 }
  0x5b   : > { %2418 = shalt.err (!%p2415_p7)
}
  0x5c   : > { %2176 = dma.hbm_to_vmem [thread:$0]  (!%p2847_p9), %s554_s1, 128, %s556_s18, %s2890_s17  }
  0x5d   : > { %s2906_s28 = scalar_lea.hbm %s3535_s4, %s2062_s15  ;;  %s424_s30 = sshll.u32 %s3538_s7, 4  ;;  %s425_s30 = int_to_ptr.hbm [resolvable:$true] %s424_s30 }
  0x5e   : > { %s2672_s19 = smov [#allocation13]   ;;  %s455_s3 = sshll.u32 %s3541_s10, 4  ;;  %s456_s3 = int_to_ptr.hbm [resolvable:$true] %s455_s3 }
  0x5f   : > { %s426_s6 = sshll.u32 %s2672_s19, 4  ;;  %s2673_s1 = smov [#allocation16]   ;;  %s427_s6 = int_to_ptr.vmem [resolvable:$true] %s426_s6 }
  0x60   : > { %2157 = dma.hbm_to_vmem [thread:$0]  (!%p2801_p10), %s425_s30, 512, %s427_s6, [#allocation12], %s3600_s11, %s3600_s11, %s3599_s12  }
  0x61   : > { %s457_s15 = sshll.u32 %s2673_s1, 4  ;;  %s486_s13 = scalar_lea.hbm %s3531_s0, %s2845_s21  ;;  %s458_s15 = int_to_ptr.vmem [resolvable:$true] %s457_s15 }
  0x62   : > { %2163 = dma.hbm_to_vmem [thread:$0]  (!%p2801_p10), %s456_s3, 512, %s458_s15, [#allocation15], %s3600_s11, %s3600_s11, %s3599_s12  }
  0x63   : > { %s487_s29 = sshll.u32 %s486_s13, 4  ;;  %s481_s25 = scalar_lea.vmem [#allocation2], %s2842_s20  ;;  %s488_s29 = int_to_ptr.hbm [resolvable:$true] %s487_s29 }
  0x64   : > { %s489_s19 = sshll.u32 %s481_s25, 4  ;;  %s478_s22 = scalar_lea.sflag [#allocation3], %s2839_s26  ;;  %s490_s19 = int_to_ptr.vmem [resolvable:$true] %s489_s19 }
  0x65   : > { %s2494_s30 = sshra.s32 %s488_s29, 4  ;;  %s2501_s27 = scalar_lea.hbm %s3531_s0, 128  ;;  %s2495_s30 = int_to_ptr.hbm [resolvable:$true] %s2494_s30 }
  0x66   : > { %s2496_s6 = scalar_lea.hbm %s2495_s30, 64  ;;  %p2502_p10 = scmp.lt.s32.totalorder %s2495_s30, %s3531_s0 }
  0x67   : > { %p2497_p1 = scmp.ne.s32.totalorder %s2495_s30, %s2496_s6  ;;  %p2503_p13 = scmp.lt.s32.totalorder %s2501_s27, %s2496_s6 }
  0x69   : > { %p2499_p11 = pnand %p2497_p1, %p2863_p12  ;;  %p2504_p0 = por %p2503_p13, %p2502_p10 }
  0x6b   : > { %p2500_p2 = pneg %p2499_p11 }
  0x6d   : > { %p2505_p5 = pnand %p2504_p0, %p2500_p2 }
  0x6f   : > { %2508 = shalt.err (!%p2505_p5)
}
  0x70   : > { %2167 = dma.hbm_to_vmem [thread:$0]  (!%p2847_p9), %s488_s29, 1024, %s490_s19, %s478_s22, %s3600_s11, %s3600_s11, %s3599_s12  }
  0x71   : > { %s530_s13 = scalar_lea.hbm %s3533_s2, %s2845_s21  ;;  %s525_s14 = scalar_lea.vmem [#allocation7], %s2842_s20 }
  0x72   : > { %s531_s25 = sshll.u32 %s530_s13, 4  ;;  %s533_s30 = sshll.u32 %s525_s14, 4  ;;  %s532_s25 = int_to_ptr.hbm [resolvable:$true] %s531_s25  ;;  %s534_s30 = int_to_ptr.vmem [resolvable:$true] %s533_s30 }
  0x73   : > { %s2524_s6 = sshra.s32 %s532_s25, 4  ;;  %s2531_s29 = scalar_lea.hbm %s3533_s2, 128  ;;  %s2525_s6 = int_to_ptr.hbm [resolvable:$true] %s2524_s6 }
  0x74   : > { %s2526_s1 = scalar_lea.hbm %s2525_s6, 64  ;;  %p2532_p2 = scmp.lt.s32.totalorder %s2525_s6, %s3533_s2 }
  0x75   : > { %p2527_p7 = scmp.ne.s32.totalorder %s2525_s6, %s2526_s1  ;;  %p2533_p10 = scmp.lt.s32.totalorder %s2531_s29, %s2526_s1 }
  0x77   : > { %p2529_p1 = pnand %p2527_p7, %p2863_p12  ;;  %p2534_p13 = por %p2533_p10, %p2532_p2 }
  0x79   : > { %p2530_p11 = pneg %p2529_p1 }
  0x7b   : > { %p2535_p0 = pnand %p2534_p13, %p2530_p11 }
  0x7d   : > { %2538 = shalt.err (!%p2535_p0)
}
  0x7e   : > { %2173 = dma.hbm_to_vmem [thread:$0]  (!%p2847_p9), %s532_s25, 1024, %s534_s30, %s2859_s23, %s3600_s11, %s3600_s11, %s3599_s12  }
  0x7f   : > { %s572_s20 = sshll.u32 %s2906_s28, 4  ;;  %s3603_s21 = sshll.u32 %s2839_s26, 3  ;;  %s573_s20 = int_to_ptr.hbm [resolvable:$true] %s572_s20 }
  0x80   : > { %s566_s9 = scalar_lea.vmem [#allocation10], %s3603_s21  ;;  %s2554_s15 = sshra.s32 %s573_s20, 4  ;;  %s2555_s15 = int_to_ptr.hbm [resolvable:$true] %s2554_s15 }
  0x81   : > { %s574_s3 = sshll.u32 %s566_s9, 4  ;;  %s2556_s13 = scalar_lea.hbm %s2555_s15, 8  ;;  %s575_s3 = int_to_ptr.vmem [resolvable:$true] %s574_s3 }
  0x82   : > { %p2557_p5 = scmp.ne.s32.totalorder %s2555_s15, %s2556_s13  ;;  %s2561_s1 = scalar_lea.hbm %s3535_s4, 16 }
  0x83   : > { %p2562_p11 = scmp.lt.s32.totalorder %s2555_s15, %s3535_s4  ;;  %p2563_p2 = scmp.lt.s32.totalorder %s2561_s1, %s2556_s13 }
  0x84   : > { %p2559_p7 = pnand %p2557_p5, %p2863_p12 }
  0x85   : > { %p2564_p10 = por %p2563_p2, %p2562_p11 }
  0x86   : > { %p2560_p1 = pneg %p2559_p7 }
  0x88   : > { %p2565_p13 = pnand %p2564_p10, %p2560_p1 }
  0x8a   : > { %2568 = shalt.err (!%p2565_p13)
}
  0x8b   : > { %2179 = dma.hbm_to_vmem [thread:$0]  (!%p2847_p9), %s573_s20, 128, %s575_s3, %s2890_s17  }
  0x8c   : > { %590 = sbr.rel (%p2793_p8) target bundleno = 1347 (0x543), region = 72  ;;  %s3604_s5 = sld [smem:[#allocation25_spill]] (!%p2793_p8) }
  0x92   : > { %s2979_s12 = sand.u32 1, %s3604_s5  }
  0x93   : > { %s2066_s23 = sshll.u32 %s2979_s12, 6  ;;  %s593_s26 = scalar_lea.sflag [#allocation3], %s2979_s12 }
  0x94   : > { %s2983_s28 = scalar_lea.vmem [#allocation2], %s2066_s23 }
  0x95   : > { %2629 = dma.done.wait (%p2780_p4), %s593_s26, 1024  }
  0x96   : > { %2631 = vsyncadd (%p2780_p4), %s593_s26, 4294966272  ;;  %s3606_s8 = sld [smem:[#allocation27_spill]]  ;;  %s2990_s25 = scalar_lea.vmem [#allocation5], %s2066_s23 }
  0x9c   : > { %s602_s17 = sand.u32 1, %s3606_s8  }
  0x9d   : > { %s603_s24 = scalar_lea.sflag [#allocation6], %s602_s17 }
  0x9e   : > { %2633 = dma.done.wait (%p2780_p4), %s603_s24, 2048  }
  0x9f   : > { %2635 = vsyncadd (%p2780_p4), %s603_s24, 4294965248  ;;  %s2997_s30 = sshll.u32 %s2979_s12, 3  ;;  %s2999_s29 = scalar_lea.vmem [#allocation7], %s2066_s23 }
  0xa0   : > { %s623_s19 = scalar_lea.sflag [#allocation9], %s602_s17  ;;  %s626_s22 = scalar_lea.vmem [#allocation8], %s2997_s30 }
  0xa1   : > { %2637 = dma.done.wait (%p2780_p4), %s623_s19, 256  }
  0xa2   : > { %2639 = vsyncadd (%p2780_p4), %s623_s19, 4294967040  ;;  %s636_s20 = scalar_lea.vmem [#allocation10], %s2997_s30  ;;  %p3607_p8 = scmp.eq.s32.totalorder %s3606_s8, 0 }
  0xa4   : > { %2641 = dma.done.wait (%p3607_p8), [#allocation12], 1024   ;;  %p3608_p9 = pmov %p3607_p8 }
  0xa5   : > { %p3609_p12 = pmov %p3607_p8 }
  0xa6   : > { %2643 = vsyncadd (%p3608_p9), [#allocation12], 4294966272 }
  0xa7   : > { %2645 = dma.done.wait (%p3609_p12), [#allocation15], 1024   ;;  %p3610_p0 = pmov %p3607_p8 }
  0xa8   : > { %v764_v0 = vld [vmem:[#allocation13 + $0x18] sm:$0xff]  ;;  %v763_v2 = vld [vmem:[#allocation13 + $0x10] sm:$0xff]  ;;  %v762_v5 = vld [vmem:[#allocation13 + $0x8] sm:$0xff]  ;;  %vm3567_vm0 = vcmask 261120   ;;  %s3611_s3 = sld [smem:[#allocation38_spill]]  ;;  %vm1143_vm1 = vcmask 1041409  }
  0xa9   : > { %2647 = vsyncadd (%p3610_p0), [#allocation15], 4294966272  ;;  %v907_v1 = vld [vmem:[#allocation14 + $0x18] sm:$0xff]  ;;  %2111 = vmatpush.msra.mxu3 %v764_v0  ;;  %v906_v3 = vld [vmem:[#allocation14 + $0x10] sm:$0xff]  ;;  %802 = vmatpush.msra.mxu0 %v764_v0  ;;  %s3612_s11 = sld [smem:[#allocation39_spill]]  ;;  %vm1145_vm2 = vcmask 1042434  }
  0xaa   : > { %944 = vmatpush.msra.mxu2 %v907_v1  ;;  %v752_v4 = vld [vmem:[#allocation11 + $0x18] sm:$0xff]  ;;  %v905_v6 = vld [vmem:[#allocation14 + $0x8] sm:$0xff]  ;;  %v751_v7 = vld [vmem:[#allocation11 + $0x10] sm:$0xff]  ;;  %s3613_s17 = sld [smem:[#allocation40_spill]]  ;;  %vm1147_vm3 = vcmask 1043459   ;;  %vm1149_vm4 = vcmask 1044484  }
  0xab   : > { %867 = vmatpush.msra.mxu1 %v752_v4  ;;  %2112 = vmatpush.msra.mxu3 %v763_v2  ;;  %v761_v8 = vld [vmem:[#allocation13] sm:$0xff]  ;;  %v750_v10 = vld [vmem:[#allocation11 + $0x8] sm:$0xff]  ;;  %v760_v11 = vld [vmem:[%s2990_s25 + $0x38] sm:$0xff]  ;;  %vm1151_vm5 = vcmask 1045509   ;;  %vm1153_vm6 = vcmask 1046534   ;;  %vm3569_vm7 = vcmask 1047559  }
  0xac   : > { %945 = vmatpush.msra.mxu2 %v906_v3  ;;  %803 = vmatpush.msra.mxu0 %v763_v2  ;;  %v904_v9 = vld [vmem:[#allocation14] sm:$0xff]  ;;  %v748_v16 = vld [vmem:[%s2983_s28 + $0x38] sm:$0xff]  ;;  %v897_v17 = vld [vmem:[%s2999_s29 + $0x8] sm:$0xff]  ;;  %vm3568_vm8 = vcmask 64512   ;;  %p733_p4 = scmp.lt.s32.totalorder %s3606_s8, 1  ;;  %s3635_s15 = sld [smem:[#allocation41_spill]] }
  0xad   : > { %868 = vmatpush.msra.mxu1 %v751_v7  ;;  %2113 = vmatpush.msra.mxu3 %v762_v5  ;;  %v896_v12 = vld [vmem:[%s2999_s29] sm:$0xff]  ;;  %v754_v18 = vld [vmem:[%s2990_s25 + $0x8] sm:$0xff]  ;;  %v898_v20 = vld [vmem:[%s2999_s29 + $0x10] sm:$0xff]  ;;  %s3639_s1 = sld [smem:[#allocation42_spill]]  ;;  %s729_s18 = scalar_lea.vmem [#allocation17], %s2997_s30 }
  0xae   : > { %946 = vmatpush.msra.mxu2 %v905_v6  ;;  %804 = vmatpush.msra.mxu0 %v762_v5  ;;  %v749_v13 = vld [vmem:[#allocation11] sm:$0xff]  ;;  %v742_v19 = vld [vmem:[%s2983_s28 + $0x8] sm:$0xff]  ;;  %v903_v21 = vld [vmem:[%s2999_s29 + $0x38] sm:$0xff]  ;;  %s3154_s24 = scalar_select %p733_p4, %s3606_s8, 1 }
  0xaf   : > { %869 = vmatpush.msra.mxu1 %v750_v10  ;;  %2114 = vmatpush.msra.mxu3 %v761_v8  ;;  %v753_v14 = vld [vmem:[%s2990_s25] sm:$0xff]  ;;  %v990_v22 = vld [vmem:[#allocation16 + $0x18] sm:$0xff]  ;;  %v755_v23 = vld [vmem:[%s2990_s25 + $0x10] sm:$0xff]  ;;  %s1812_s5 = sshll.u32 %s729_s18, 4  ;;  %s1797_s23 = scalar_lea.sflag [#allocation4], %s2979_s12  ;;  %s1813_s5 = int_to_ptr.vmem [resolvable:$true] %s1812_s5 }
  0xb0   : > { %947 = vmatpush.msra.mxu2 %v904_v9  ;;  %2085 = vmatmul.msk.f32.vlgmr.msra.gmra.mxu3 %vm3567_vm0, %v760_v11  ;;  %v741_v15 = vld [vmem:[%s2983_s28] sm:$0xff]  ;;  %v989_v24 = vld [vmem:[#allocation16 + $0x10] sm:$0xff]  ;;  %v988_v26 = vld [vmem:[#allocation16 + $0x8] sm:$0xff] }
  0xb1   : > { %2094 = vmatmul.msk.f32.vlgmr.msra.gmra.mxu2 %vm3567_vm0, %v896_v12  ;;  %2115 = vmatpush.msrb.mxu3 %v752_v4  ;;  %v743_v25 = vld [vmem:[%s2983_s28 + $0x10] sm:$0xff]  ;;  %v987_v27 = vld [vmem:[#allocation16] sm:$0xff]  ;;  %v899_v28 = vld [vmem:[%s2999_s29 + $0x18] sm:$0xff] }
  0xb2   : > { %805 = vmatpush.msra.mxu0 %v761_v8  ;;  %870 = vmatpush.msra.mxu1 %v749_v13  ;;  %v986_v29 = vld [vmem:[%s636_s20] sm:$0xff]  ;;  %v983_v34 = vld [vmem:[%s3611_s3 + $0x8] sm:$0xff]  ;;  %v982_v35 = vld [vmem:[%s3611_s3] sm:$0xff] }
  0xb3   : > { %2078 = vmatmul.msk.f32.vlgmr.msra.gmra.mxu0 %vm3567_vm0, %v753_v14  ;;  %2116 = vmatpush.msrb.mxu3 %v751_v7  ;;  %v985_v30 = vld [vmem:[%s3611_s3 + $0x18] sm:$0xff]  ;;  %v984_v32 = vld [vmem:[%s3611_s3 + $0x10] sm:$0xff]  ;;  %v900_v36 = vld [vmem:[%s2999_s29 + $0x20] sm:$0xff] }
  0xb4   : > { %2086 = vmatmul.msk.f32.vlgmr.msra.gmra.mxu1 %vm3567_vm0, %v741_v15  ;;  %v756_v31 = vld [vmem:[%s2990_s25 + $0x18] sm:$0xff]  ;;  %v981_v37 = vld [vmem:[%s626_s22] sm:$0xff]  ;;  %v902_v43 = vld [vmem:[%s2999_s29 + $0x30] sm:$0xff]  ;;  %s3614_s22 = sld [smem:[#allocation35_spill]] }
  0xb5   : > { %2117 = vmatpush.msrb.mxu3 %v750_v10  ;;  %v744_v33 = vld [vmem:[%s2983_s28 + $0x18] sm:$0xff]  ;;  %v757_v38 = vld [vmem:[%s2990_s25 + $0x20] sm:$0xff]  ;;  %v901_v40 = vld [vmem:[%s2999_s29 + $0x28] sm:$0xff] }
  0xb6   : > { %v745_v39 = vld [vmem:[%s2983_s28 + $0x20] sm:$0xff]  ;;  %v758_v41 = vld [vmem:[%s2990_s25 + $0x28] sm:$0xff]  ;;  %v759_v44 = vld [vmem:[%s2990_s25 + $0x30] sm:$0xff]  ;;  %s2076_s25 = sshll.u32 %s3154_s24, 3 }
  0xb7   : > { %2118 = vmatpush.msrb.mxu3 %v749_v13  ;;  %v746_v42 = vld [vmem:[%s2983_s28 + $0x28] sm:$0xff]  ;;  %v747_v45 = vld [vmem:[%s2983_s28 + $0x30] sm:$0xff]  ;;  %v3084_v11 = vld [vmem:[%s3612_s11] ss:$0 sm:$0xff]  ;;  %s740_s13 = scalar_lea.vmem %s3635_s15, %s2076_s25 }
  0xb8   : > { %2093 = vmatmul.msk.f32.vlgmr.msrb.gmra.mxu3 %vm3567_vm0, %v748_v16 }
  0xb9   : > { %2095 = vmatmul.msk.f32.gmra.mxu2 %vm3567_vm0, %v897_v17  ;;  %2119 = vmatpush.msra.mxu3 %v907_v1 }
  0xba   : > { %s736_s20 = scalar_lea.vmem %s3614_s22, %s2076_s25  ;;  %s2604_s25 = scalar_lea.hbm %s3639_s1, 16 }
  0xbb   : > { %2079 = vmatmul.msk.f32.gmra.mxu0 %vm3567_vm0, %v754_v18  ;;  %2120 = vmatpush.msra.mxu3 %v906_v3 }
  0xbc   : > { %2087 = vmatmul.msk.f32.gmra.mxu1 %vm3567_vm0, %v742_v19 }
  0xbd   : > { %2121 = vmatpush.msra.mxu3 %v905_v6 }
  0xbf   : > { %2122 = vmatpush.msra.mxu3 %v904_v9 }
  0xc0   : > { %2101 = vmatmul.msk.f32.vlgmr.msra.gmra.mxu3 %vm3567_vm0, %v903_v21 }
  0xc1   : > { %2096 = vmatmul.msk.f32.gmra.mxu2 %vm3567_vm0, %v898_v20  ;;  %1006 = vmatpush.msrb.mxu3 %v990_v22 }
  0xc3   : > { %2080 = vmatmul.msk.f32.gmra.mxu0 %vm3567_vm0, %v755_v23  ;;  %1007 = vmatpush.msrb.mxu3 %v989_v24 }
  0xc4   : > { %2088 = vmatmul.msk.f32.gmra.mxu1 %vm3567_vm0, %v743_v25 }
  0xc5   : > { %1008 = vmatpush.msrb.mxu3 %v988_v26 }
  0xc7   : > { %1009 = vmatpush.msrb.mxu3 %v987_v27 }
  0xc8   : > { %2102 = vmatmul.msk.f32.vlgmr.msrb.gmra.mxu3 %vm3567_vm0, %v986_v29 }
  0xc9   : > { %2097 = vmatmul.msk.f32.gmra.mxu2 %vm3567_vm0, %v899_v28  ;;  %1029 = vmatpush.msra.mxu3 %v985_v30 }
  0xcb   : > { %2081 = vmatmul.msk.f32.gmra.mxu0 %vm3567_vm0, %v756_v31  ;;  %1030 = vmatpush.msra.mxu3 %v984_v32 }
  0xcc   : > { %2089 = vmatmul.msk.f32.gmra.mxu1 %vm3567_vm0, %v744_v33 }
  0xcd   : > { %1031 = vmatpush.msra.mxu3 %v983_v34 }
  0xcf   : > { %1032 = vmatpush.msra.mxu3 %v982_v35 }
  0xd0   : > { %2103 = vmatmul.msk.f32.vlgmr.msra.gmra.mxu3 %vm3567_vm0, %v981_v37 }
  0xd1   : > { %2098 = vmatmul.msk.f32.gmra.mxu2 %vm3567_vm0, %v900_v36 }
  0xd3   : > { %2082 = vmatmul.msk.f32.gmra.mxu0 %vm3567_vm0, %v757_v38 }
  0xd4   : > { %2090 = vmatmul.msk.f32.gmra.mxu1 %vm3567_vm0, %v745_v39 }
  0xd9   : > { %2099 = vmatmul.msk.f32.gmra.mxu2 %vm3567_vm0, %v901_v40 }
  0xdb   : > { %2083 = vmatmul.msk.f32.gmra.mxu0 %vm3567_vm0, %v758_v41 }
  0xdc   : > { %2091 = vmatmul.msk.f32.gmra.mxu1 %vm3567_vm0, %v746_v42 }
  0xe1   : > { %2100 = vmatmul.msk.f32.gmra.mxu2 %vm3567_vm0, %v902_v43  ;;  %v2241_v43 = vld [vmem:[%s3613_s17] ss:$0 sm:$0xff] }
  0xe3   : > { %2084 = vmatmul.msk.f32.gmra.mxu0 %vm3567_vm0, %v759_v44 }
  0xe4   : > { %2092 = vmatmul.msk.f32.gmra.mxu1 %vm3567_vm0, %v747_v45 }
 0x130   : > { %v807_v46 = vpop.f32.mrf.mxu0 }
 0x131   : > { %v872_v47 = vpop.f32.mrf.mxu1 }
 0x132   : > { %v873_v0 = vadd.f32 %v872_v47, %v807_v46 }
 0x133   : > { %v828_v48 = vpop.f32.mrf.mxu3 }
 0x134   : > { %v949_v49 = vpop.f32.mrf.mxu2 }
 0x135   : > { %v973_v8 = vadd.f32 %v949_v49, %v873_v0 }
 0x138   : > { %v810_v50 = vpop.f32.mrf.mxu0 }
 0x139   : > { %v875_v51 = vpop.f32.mrf.mxu1 }
 0x13a   : > { %v876_v1 = vadd.f32 %v875_v51, %v810_v50 }
 0x13b   : > { %v893_v52 = vpop.f32.mrf.mxu3 }
 0x13c   : > { %v952_v53 = vpop.f32.mrf.mxu2  ;;  %v894_v41 = vadd.f32 %v893_v52, %v828_v48 }
 0x13d   : > { %v974_v9 = vadd.f32 %v952_v53, %v876_v1 }
 0x140   : > { %v813_v54 = vpop.f32.mrf.mxu0 }
 0x141   : > { %v878_v55 = vpop.f32.mrf.mxu1 }
 0x142   : > { %v879_v3 = vadd.f32 %v878_v55, %v813_v54 }
 0x143   : > { %v970_v57 = vpop.f32.mrf.mxu3 }
 0x144   : > { %v955_v56 = vpop.f32.mrf.mxu2  ;;  %v980_v50 = vadd.f32 %v970_v57, %v894_v41 }
 0x145   : > { %v975_v14 = vadd.f32 %v955_v56, %v879_v3 }
 0x148   : > { %v816_v58 = vpop.f32.mrf.mxu0 }
 0x149   : > { %v881_v59 = vpop.f32.mrf.mxu1 }
 0x14a   : > { %v882_v6 = vadd.f32 %v881_v59, %v816_v58 }
 0x14b   : > { %v1011_v61 = vpop.f32.mrf.mxu3 }
 0x14c   : > { %v958_v60 = vpop.f32.mrf.mxu2 }
 0x14d   : > { %v976_v19 = vadd.f32 %v958_v60, %v882_v6 }
 0x150   : > { %v819_v62 = vpop.f32.mrf.mxu0 }
 0x151   : > { %v884_v63 = vpop.f32.mrf.mxu1 }
 0x152   : > { %v885_v2 = vadd.f32 %v884_v63, %v819_v62 }
 0x153   : > { %v1034_v5 = vpop.f32.mrf.mxu3 }
 0x154   : > { %v961_v4 = vpop.f32.mrf.mxu2  ;;  %v1035_v7 = vadd.f32 %v1034_v5, %v1011_v61 }
 0x155   : > { %v977_v10 = vadd.f32 %v961_v4, %v885_v2 }
 0x156   : > { %v1045_v12 = vperm.slane %v1035_v7, 0  ;;  %v1041_v13 = vrot.slane %v1035_v7, 4  ;;  %v1039_v16 = vrot.slane %v1035_v7, 2  ;;  %v1038_v17 = vrot.slane %v1035_v7, 1 }
 0x157   : > { %v1040_v18 = vrot.slane %v1035_v7, 3  ;;  %v1042_v21 = vrot.slane %v1035_v7, 5  ;;  %v1044_v34 = vrot.slane %v1035_v7, 7  ;;  %v1043_v49 = vrot.slane %v1035_v7, 6 }
 0x158   : > { %v822_v15 = vpop.f32.mrf.mxu0  ;;  %v1061_v22 = vadd.f32 %v1045_v12, %v973_v8  ;;  %v1049_v23 = vperm.slane %v1041_v13, 0  ;;  %v1047_v25 = vperm.slane %v1039_v16, 0  ;;  %v1046_v26 = vperm.slane %v1038_v17, 0 }
 0x159   : > { %v887_v20 = vpop.f32.mrf.mxu1  ;;  %v1048_v27 = vperm.slane %v1040_v18, 0  ;;  %v1050_v36 = vperm.slane %v1042_v21, 0  ;;  %v1052_v45 = vperm.slane %v1044_v34, 0  ;;  %v1051_v58 = vperm.slane %v1043_v49, 0 }
 0x15a   : > { %v888_v24 = vadd.f32 %v887_v20, %v822_v15  ;;  %v1073_v28 = vadd.f32 %v3084_v11, %v1061_v22  ;;  %v1065_v29 = vadd.f32 %v1049_v23, %v977_v10  ;;  %v1063_v31 = vadd.f32 %v1047_v25, %v975_v14 }
 0x15b   : > { %v1062_v32 = vadd.f32 %v1046_v26, %v974_v9  ;;  %v1064_v33 = vadd.f32 %v1048_v27, %v976_v19  ;;  %v1068_v52 = vadd.f32 %v1052_v45, %v980_v50  ;;  %v1133_v19 = vlaneseq }
 0x15c   : > { %v964_v30 = vpop.f32.mrf.mxu2  ;;  %2242 = vtanh.f32 %v1073_v28  ;;  %v1077_v37 = vadd.f32 %v3084_v11, %v1065_v29  ;;  %v1075_v38 = vadd.f32 %v3084_v11, %v1063_v31 }
 0x15d   : > { %v978_v35 = vadd.f32 %v964_v30, %v888_v24  ;;  %v1074_v39 = vadd.f32 %v3084_v11, %v1062_v32  ;;  %v1076_v44 = vadd.f32 %v3084_v11, %v1064_v33  ;;  %v1080_v1 = vadd.f32 %v3084_v11, %v1068_v52 }
 0x15e   : > { %2244 = vtanh.f32 %v1077_v37  ;;  %v3106_v22 = vand.u32 127, %v1133_v19 }
 0x15f   : > { %v1066_v40 = vadd.f32 %v1050_v36, %v978_v35  ;;  %2246 = vtanh.f32 %v1075_v38 }
 0x160   : > { %v825_v42 = vpop.f32.mrf.mxu0  ;;  %2248 = vtanh.f32 %v1074_v39 }
 0x161   : > { %v1078_v46 = vadd.f32 %v3084_v11, %v1066_v40  ;;  %v890_v47 = vpop.f32.mrf.mxu1 }
 0x162   : > { %v891_v51 = vadd.f32 %v890_v47, %v825_v42  ;;  %v2243_v53 = vpop.eup %2242 }
 0x163   : > { %2250 = vtanh.f32 %v1078_v46  ;;  %v1093_v48 = vmul.f32 %v2243_v53, %v2241_v43 }
 0x164   : > { %v967_v54 = vpop.f32.mrf.mxu2  ;;  %2252 = vtanh.f32 %v1076_v44  ;;  %v2245_v55 = vpop.eup %2244  ;;  %v2674_v44 = vmov 0  }
 0x165   : > { %v979_v56 = vadd.f32 %v967_v54, %v891_v51  ;;  %v2247_v59 = vpop.eup %2246  ;;  %v1101_v60 = vsel %vm3567_vm0, %v1093_v48, 0.0  ;;  %v1097_v61 = vmul.f32 %v2245_v55, %v2241_v43  ;;  %2235 = vset.pattern.permute.xlu2 %v2674_v44  ;;  %2234 = vset.pattern.permute.xlu1 %v2674_v44 }
 0x166   : > { %v2249_v62 = vpop.eup %2248  ;;  %1102 = vadd.xlane.f32.xlu0 %v1101_v60  ;;  %v1095_v0 = vmul.f32 %v2247_v59, %v2241_v43 }
 0x167   : > { %v1067_v63 = vadd.f32 %v1051_v58, %v979_v56  ;;  %v1113_v57 = vsel %vm3567_vm0, %v1097_v61, 0.0  ;;  %v1094_v6 = vmul.f32 %v2249_v62, %v2241_v43  ;;  %2233 = vset.pattern.permute.xlu0 %v2674_v44 }
 0x168   : > { %1114 = vadd.xlane.f32.xlu2 %v1113_v57  ;;  %v1107_v4 = vsel %vm3567_vm0, %v1095_v0, 0.0 }
 0x169   : > { %v2251_v2 = vpop.eup %2250  ;;  %v1079_v3 = vadd.f32 %v3084_v11, %v1067_v63  ;;  %1108 = vadd.xlane.f32.xlu1 %v1107_v4  ;;  %v1104_v9 = vsel %vm3567_vm0, %v1094_v6, 0.0 }
 0x16a   : > { %v2253_v5 = vpop.eup %2252  ;;  %v1098_v7 = vmul.f32 %v2251_v2, %v2241_v43 }
 0x16b   : > { %2254 = vtanh.f32 %v1079_v3  ;;  %v1096_v8 = vmul.f32 %v2253_v5, %v2241_v43 }
 0x16c   : > { %2256 = vtanh.f32 %v1080_v1  ;;  %v1116_v10 = vsel %vm3567_vm0, %v1098_v7, 0.0 }
 0x16d   : > { %v1110_v13 = vsel %vm3567_vm0, %v1096_v8, 0.0 }
 0x16e   : > { %1105 = vadd.xlane.f32.xlu0 %v1104_v9 }
 0x170   : > { %1117 = vadd.xlane.f32.xlu2 %v1116_v10 }
 0x171   : > { %v2255_v12 = vpop.eup %2254  ;;  %1111 = vadd.xlane.f32.xlu1 %v1110_v13 }
 0x172   : > { %v2257_v11 = vpop.eup %2256  ;;  %v1099_v14 = vmul.f32 %v2255_v12, %v2241_v43 }
 0x173   : > { %v1100_v15 = vmul.f32 %v2257_v11, %v2241_v43 }
 0x174   : > { %v1119_v16 = vsel %vm3567_vm0, %v1099_v14, 0.0  ;;  %v1395_v14 = vshrl.u32 %v1133_v19, 7 }
 0x175   : > { %v1122_v17 = vsel %vm3567_vm0, %v1100_v15, 0.0  ;;  %v1391_v15 = vld [vmem:[%s736_s20] sm:$0xff] }
 0x176   : > { %1120 = vadd.xlane.f32.xlu0 %v1119_v16  ;;  %v1393_v16 = vperm.slane %v1391_v15, 0 }
 0x179   : > { %1123 = vadd.xlane.f32.xlu1 %v1122_v17  ;;  %v1407_v17 = vperm.slane %v1391_v15, 2 }
 0x1d9   : > { %v1103_v18 = vpop.xlane.xlu0 %1102 }
 0x1da   : > { %v1135_v24 = vperm.slane %v1103_v18, %v3106_v22 }
 0x1db   : > { %v1115_v20 = vpop.xlane.xlu2 %1114 }
 0x1dc   : > { %v1109_v21 = vpop.xlane.xlu1 %1108  ;;  %v1139_v31 = vperm.slane %v1115_v20, %v3106_v22 }
 0x1dd   : > { %v1137_v26 = vperm.slane %v1109_v21, %v3106_v22 }
 0x1e1   : > { %v1106_v23 = vpop.xlane.xlu0 %1105 }
 0x1e2   : > { %v1136_v25 = vperm.slane %v1106_v23, %v3106_v22 }
 0x1e3   : > { %v1118_v32 = vpop.xlane.xlu2 %1117 }
 0x1e4   : > { %v1144_v27 = vsel %vm1143_vm1, %v1136_v25, %v1135_v24  ;;  %v1112_v28 = vpop.xlane.xlu1 %1111  ;;  %v1140_v35 = vperm.slane %v1118_v32, %v3106_v22 }
 0x1e5   : > { %v1138_v29 = vperm.slane %v1112_v28, %v3106_v22  ;;  %v1146_v30 = vsel %vm1145_vm2, %v1137_v26, %v1144_v27 }
 0x1e7   : > { %v1148_v33 = vsel %vm1147_vm3, %v1138_v29, %v1146_v30  ;;  %v1442_v29 = vperm.slane %v1391_v15, 7  ;;  %v1435_v30 = vperm.slane %v1391_v15, 6 }
 0x1e8   : > { %v1150_v34 = vsel %vm1149_vm4, %v1139_v31, %v1148_v33 }
 0x1e9   : > { %v1121_v36 = vpop.xlane.xlu0 %1120  ;;  %v1152_v38 = vsel %vm1151_vm5, %v1140_v35, %v1150_v34 }
 0x1ea   : > { %v1141_v37 = vperm.slane %v1121_v36, %v3106_v22 }
 0x1ec   : > { %v1124_v39 = vpop.xlane.xlu1 %1123  ;;  %v1154_v40 = vsel %vm1153_vm6, %v1141_v37, %v1152_v38 }
 0x1ed   : > { %v1142_v41 = vperm.slane %v1124_v39, %v3106_v22 }
 0x1ef   : > { %v1156_v42 = vsel %vm3569_vm7, %v1142_v41, %v1154_v40 }
 0x1f0   : > { %v1159_v43 = vsel %vm3568_vm8, %v1156_v42, -inf }
 0x1f1   : > { %1160 = vmax.xlane.f32.xlu2 %v1159_v43 }
 0x264   : > { %v1161_v45 = vpop.xlane.xlu2 %1160 }
 0x265   : > { %v1165_v46 = vperm.slane %v1161_v45, 2  ;;  %v1164_v47 = vperm.slane %v1161_v45, 1  ;;  %v1163_v49 = vperm.slane %v1161_v45, 0  ;;  %v1166_v54 = vperm.slane %v1161_v45, 3 }
 0x266   : > { %v1167_v48 = vperm.slane %v1161_v45, 4  ;;  %v1170_v52 = vperm.slane %v1161_v45, 7  ;;  %v1168_v63 = vperm.slane %v1161_v45, 5  ;;  %v1169_v57 = vperm.slane %v1161_v45, 6 }
 0x267   : > { %v1181_v50 = vsub.f32 %v1109_v21, %v1165_v46  ;;  %v1180_v51 = vsub.f32 %v1106_v23, %v1164_v47  ;;  %v1179_v53 = vsub.f32 %v1103_v18, %v1163_v49  ;;  %v1182_v59 = vsub.f32 %v1112_v28, %v1166_v54 }
 0x268   : > { %v1183_v60 = vsub.f32 %v1115_v20, %v1167_v48  ;;  %v1186_v61 = vsub.f32 %v1124_v39, %v1170_v52  ;;  %v1184_v5 = vsub.f32 %v1118_v32, %v1168_v63  ;;  %v1185_v6 = vsub.f32 %v1121_v36, %v1169_v57 }
 0x269   : > { %v1191_v55 = vmul.f32 1.442695, %v1181_v50  ;;  %v1189_v56 = vmul.f32 1.442695, %v1180_v51  ;;  %v1187_v58 = vmul.f32 1.442695, %v1179_v53 }
 0x26a   : > { %v1193_v62 = vmul.f32 1.442695, %v1182_v59  ;;  %v1195_v0 = vmul.f32 1.442695, %v1183_v60  ;;  %v1201_v2 = vmul.f32 1.442695, %v1186_v61 }
 0x26b   : > { %2258 = vpow2.f32 %v1191_v55  ;;  %v1197_v7 = vmul.f32 1.442695, %v1184_v5  ;;  %v1199_v8 = vmul.f32 1.442695, %v1185_v6  ;;  %v1414_v18 = vperm.slane %v1391_v15, 3 }
 0x26c   : > { %2260 = vpow2.f32 %v1189_v56  ;;  %v1400_v20 = vperm.slane %v1391_v15, 1  ;;  %v1428_v21 = vperm.slane %v1391_v15, 5  ;;  %v1421_v23 = vperm.slane %v1391_v15, 4 }
 0x26d   : > { %2262 = vpow2.f32 %v1187_v58 }
 0x26e   : > { %2264 = vpow2.f32 %v1193_v62 }
 0x26f   : > { %2266 = vpow2.f32 %v1195_v0 }
 0x270   : > { %2268 = vpow2.f32 %v1201_v2 }
 0x271   : > { %v3127_v1 = vpop.eup %2258  ;;  %2270 = vpow2.f32 %v1197_v7 }
 0x272   : > { %v3129_v3 = vpop.eup %2260  ;;  %1218 = vperm.xlu2 %2235, %v3127_v1   ;;  %2272 = vpow2.f32 %v1199_v8 }
 0x273   : > { %v3132_v4 = vpop.eup %2262  ;;  %1215 = vperm.xlu1 %2234, %v3129_v3  }
 0x274   : > { %1212 = vperm.xlu0 %2233, %v3132_v4   ;;  %v3136_v9 = vpop.eup %2264 }
 0x275   : > { %v3138_v10 = vpop.eup %2266 }
 0x276   : > { %v3141_v12 = vpop.eup %2268 }
 0x277   : > { %v3145_v13 = vpop.eup %2270 }
 0x278   : > { %v3147_v11 = vpop.eup %2272 }
 0x27a   : > { %1221 = vperm.xlu2 %2235, %v3136_v9  }
 0x27b   : > { %1224 = vperm.xlu1 %2234, %v3138_v10  }
 0x27c   : > { %1233 = vperm.xlu0 %2233, %v3141_v12  }
 0x282   : > { %1227 = vperm.xlu2 %2235, %v3145_v13  }
 0x283   : > { %1230 = vperm.xlu1 %2234, %v3147_v11  }
 0x284   : > { %2237 = vset.pattern.permute.xlu0 %v1395_v14 }
 0x28b   : > { %2236 = vset.pattern.permute.xlu1 %v1395_v14 }
 0x28c   : > { %1405 = vperm.xlu0 %2237, %v1400_v20  }
 0x293   : > { %1398 = vperm.xlu1 %2236, %v1393_v16  }
 0x294   : > { %1426 = vperm.xlu0 %2237, %v1421_v23  }
 0x29b   : > { %1412 = vperm.xlu1 %2236, %v1407_v17  }
 0x29c   : > { %1440 = vperm.xlu0 %2237, %v1435_v30  }
 0x2a3   : > { %1419 = vperm.xlu1 %2236, %v1414_v18  }
 0x2a4   : > { %2238 = vset.pattern.permute.xlu0 %v2674_v44 }
 0x2ab   : > { %1433 = vperm.xlu1 %2236, %v1428_v21  }
 0x2b3   : > { %1447 = vperm.xlu1 %2236, %v1442_v29  }
 0x2bb   : > { %2239 = vset.pattern.permute.xlu1 %v2674_v44 }
 0x2cc   : > { %v1219_v19 = vpop.permute.xlu2 %1218 }
 0x2cd   : > { %v1237_v33 = vperm.slane %v1219_v19, %v3106_v22 }
 0x2d4   : > { %v1222_v26 = vpop.permute.xlu2 %1221 }
 0x2d5   : > { %v1238_v36 = vperm.slane %v1222_v26, %v3106_v22 }
 0x2dc   : > { %v1228_v37 = vpop.permute.xlu2 %1227 }
 0x2dd   : > { %v1240_v41 = vperm.slane %v1228_v37, %v3106_v22 }
 0x2e5   : > { %v1216_v24 = vpop.permute.xlu1 %1215 }
 0x2e6   : > { %v1213_v25 = vpop.permute.xlu0 %1212  ;;  %v1236_v27 = vperm.slane %v1216_v24, %v3106_v22 }
 0x2e7   : > { %v1235_v28 = vperm.slane %v1213_v25, %v3106_v22 }
 0x2e9   : > { %v1243_v31 = vsel %vm1143_vm1, %v1236_v27, %v1235_v28 }
 0x2ea   : > { %v1244_v34 = vsel %vm1145_vm2, %v1237_v33, %v1243_v31 }
 0x2eb   : > { %v1245_v38 = vsel %vm1147_vm3, %v1238_v36, %v1244_v34 }
 0x2ed   : > { %v1225_v32 = vpop.permute.xlu1 %1224 }
 0x2ee   : > { %v1239_v35 = vperm.slane %v1225_v32, %v3106_v22  ;;  %v1234_v40 = vpop.permute.xlu0 %1233 }
 0x2ef   : > { %v1242_v45 = vperm.slane %v1234_v40, %v3106_v22 }
 0x2f0   : > { %v1246_v39 = vsel %vm1149_vm4, %v1239_v35, %v1245_v38 }
 0x2f1   : > { %v1247_v46 = vsel %vm1151_vm5, %v1240_v41, %v1246_v39 }
 0x2f5   : > { %v1231_v42 = vpop.permute.xlu1 %1230 }
 0x2f6   : > { %v1241_v43 = vperm.slane %v1231_v42, %v3106_v22 }
 0x2f8   : > { %v1248_v47 = vsel %vm1153_vm6, %v1241_v43, %v1247_v46 }
 0x2f9   : > { %v1249_v49 = vsel %vm3569_vm7, %v1242_v45, %v1248_v47 }
 0x2fa   : > { %v1251_v50 = vsel %vm3568_vm8, %v1249_v49, 0.0 }
 0x2fb   : > { %1252 = vadd.xlane.f32.xlu2 %v1251_v50 }
 0x305   : > { %v3194_v62 = vpop.permute.xlu1 %1398 }
 0x30d   : > { %v1413_v35 = vpop.permute.xlu1 %1412 }
 0x36e   : > { %v1253_v51 = vpop.xlane.xlu2 %1252 }
 0x36f   : > { %v3180_v53 = vperm.slane %v1253_v51, 0  ;;  %v1257_v54 = vperm.slane %v1253_v51, 2  ;;  %v1256_v44 = vperm.slane %v1253_v51, 1  ;;  %v3183_v48 = vperm.slane %v1253_v51, 4 }
 0x370   : > { %v3187_v55 = vperm.slane %v1253_v51, 5  ;;  %v3190_v58 = vperm.slane %v1253_v51, 6  ;;  %v3196_v63 = vperm.slane %v1253_v51, 3  ;;  %v3202_v5 = vperm.slane %v1253_v51, 7 }
 0x371   : > { %2274 = vrcp.f32 %v3180_v53  ;;  %v1312_v7 = vand.u32 2147483648, %v1257_v54  ;;  %v1310_v15 = vand.u32 2147483647, %v1257_v54  ;;  %v1295_v17 = vand.u32 2147483647, %v1256_v44 }
 0x372   : > { %2276 = vrcp.f32 %v1257_v54  ;;  %v1297_v18 = vand.u32 2147483648, %v1256_v44  ;;  %vm1306_vm11 = vweird.f32 %v1257_v54  ;;  %vm1291_vm12 = vweird.f32 %v1256_v44 }
 0x373   : > { %2278 = vrcp.f32 %v1256_v44  ;;  %v1313_v24 = vor.u32 1.1754944e-38, %v1312_v7  ;;  %vm1311_vm14 = vcmp.eq.f32.partialorder %v1310_v15, 8.507059e+37  ;;  %vm1296_vm0 = vcmp.eq.f32.partialorder %v1295_v17, 8.507059e+37 }
 0x374   : > { %2280 = vrcp.f32 %v3183_v48  ;;  %v1298_v29 = vor.u32 1.1754944e-38, %v1297_v18  ;;  %v1280_v46 = vand.u32 2147483647, %v3180_v53  ;;  %v1282_v50 = vand.u32 2147483648, %v3180_v53 }
 0x375   : > { %2282 = vrcp.f32 %v3187_v55 }
 0x376   : > { %2284 = vrcp.f32 %v3190_v58 }
 0x377   : > { %v3185_v52 = vpop.eup %2274  ;;  %2286 = vrcp.f32 %v3196_v63 }
 0x378   : > { %v2277_v56 = vpop.eup %2276  ;;  %v1272_v60 = vmul.f32 %v3185_v52, %v3180_v53  ;;  %2288 = vrcp.f32 %v3202_v5 }
 0x379   : > { %v1302_v59 = vmul.f32 %v2277_v56, %v1257_v54  ;;  %v2279_v61 = vpop.eup %2278  ;;  %vm1307_vm9 = vweird.f32 %v2277_v56 }
 0x37a   : > { %v1287_v57 = vmul.f32 %v2279_v61, %v1256_v44  ;;  %v3200_v2 = vpop.eup %2280  ;;  %v1273_v16 = vsub.f32 1.0, %v1272_v60  ;;  %vm1292_vm10 = vweird.f32 %v2279_v61  ;;  %vm1308_vm13 = vmor %vm1306_vm11, %vm1307_vm9  ;;  %vm1277_vm9 = vweird.f32 %v3185_v52 }
 0x37b   : > { %v1303_v0 = vsub.f32 1.0, %v1302_v59  ;;  %v1332_v14 = vmul.f32 %v3200_v2, %v3183_v48  ;;  %v3207_v21 = vpop.eup %2282  ;;  %vm1293_vm15 = vmor %vm1291_vm12, %vm1292_vm10  ;;  %vm1337_vm10 = vweird.f32 %v3200_v2  ;;  %vm1336_vm12 = vweird.f32 %v3183_v48 }
 0x37c   : > { %v1288_v8 = vsub.f32 1.0, %v1287_v57  ;;  %v3211_v25 = vpop.eup %2284  ;;  %v1274_v28 = vmul.f32 %v3185_v52, %v1273_v16  ;;  %v1347_v31 = vmul.f32 %v3207_v21, %v3187_v55  ;;  %v1342_v59 = vand.u32 2147483648, %v3183_v48 }
 0x37d   : > { %v1304_v6 = vmul.f32 %v2277_v56, %v1303_v0  ;;  %v1333_v23 = vsub.f32 1.0, %v1332_v14  ;;  %v3217_v34 = vpop.eup %2286  ;;  %v1362_v38 = vmul.f32 %v3211_v25, %v3190_v58  ;;  %v1283_v60 = vor.u32 1.1754944e-38, %v1282_v50 }
 0x37e   : > { %v1289_v20 = vmul.f32 %v2279_v61, %v1288_v8  ;;  %v1275_v41 = vadd.f32 %v3185_v52, %v1274_v28  ;;  %v3227_v42 = vpop.eup %2288  ;;  %v1348_v43 = vsub.f32 1.0, %v1347_v31  ;;  %v1317_v54 = vmul.f32 %v3217_v34, %v3196_v63 }
 0x37f   : > { %v1305_v19 = vadd.f32 %v2277_v56, %v1304_v6  ;;  %v1334_v37 = vmul.f32 %v3200_v2, %v1333_v23  ;;  %v1363_v47 = vsub.f32 1.0, %v1362_v38  ;;  %v1377_v44 = vmul.f32 %v3227_v42, %v3202_v5 }
 0x380   : > { %v1290_v26 = vadd.f32 %v2279_v61, %v1289_v20  ;;  %v1325_v14 = vand.u32 2147483647, %v3196_v63  ;;  %v1343_v16 = vor.u32 1.1754944e-38, %v1342_v59  ;;  %v1355_v20 = vand.u32 2147483647, %v3187_v55 }
 0x381   : > { %v1309_v27 = vsel %vm1308_vm13, %v2277_v56, %v1305_v19  ;;  %v1340_v56 = vand.u32 2147483647, %v3183_v48  ;;  %vm1351_vm13 = vweird.f32 %v3187_v55  ;;  %v1364_v57 = vmul.f32 %v3211_v25, %v1363_v47 }
 0x382   : > { %v1314_v30 = vsel %vm1311_vm14, %v1313_v24, %v1309_v27  ;;  %v1294_v32 = vsel %vm1293_vm15, %v2279_v61, %v1290_v26  ;;  %vm3254_vm14 = vmor %vm1336_vm12, %vm1337_vm10  ;;  %vm1281_vm15 = vcmp.eq.f32.partialorder %v1280_v46, 8.507059e+37  ;;  %v1327_v48 = vand.u32 2147483648, %v3196_v63 }
 0x383   : > { %v1315_v33 = vmul.f32 %v3127_v1, %v1314_v30  ;;  %v1299_v36 = vsel %vm1296_vm0, %v1298_v29, %v1294_v32  ;;  %v1406_v1 = vpop.permute.xlu0 %1405  ;;  %vm1276_vm0 = vweird.f32 %v3180_v53  ;;  %v1349_v53 = vmul.f32 %v3207_v21, %v1348_v43 }
 0x384   : > { %v1300_v39 = vmul.f32 %v3129_v3, %v1299_v36  ;;  %v1335_v3 = vadd.f32 %v3200_v2, %v1334_v37  ;;  %vm3236_vm11 = vmor %vm1276_vm0, %vm1277_vm9  ;;  %vm1322_vm9 = vweird.f32 %v3217_v34  ;;  %vm1352_vm0 = vweird.f32 %v3207_v21 }
 0x385   : > { %v3223_v40 = vmul.f32 %v1413_v35, %v1315_v33  ;;  %v1279_v51 = vsel %vm3236_vm11, %v3185_v52, %v1275_v41  ;;  %v1318_v52 = vsub.f32 1.0, %v1317_v54  ;;  %v1378_v15 = vsub.f32 1.0, %v1377_v44  ;;  %vm3284_vm8 = vmor %vm1351_vm13, %vm1352_vm0 }
 0x386   : > { %v3229_v45 = vmul.f32 %v1406_v1, %v1300_v39  ;;  %v1339_v0 = vsel %vm3254_vm14, %v3200_v2, %v1335_v3  ;;  %v1284_v6 = vsel %vm1281_vm15, %v1283_v60, %v1279_v51  ;;  %vm1341_vm10 = vcmp.eq.f32.partialorder %v1340_v56, 8.507059e+37 }
 0x387   : > { %1480 = vperm.xlu2 %2235, %v3223_v40   ;;  %v1285_v7 = vmul.f32 %v3132_v4, %v1284_v6  ;;  %v1319_v8 = vmul.f32 %v3217_v34, %v1318_v52  ;;  %v1350_v2 = vadd.f32 %v3207_v21, %v1349_v53  ;;  %vm1321_vm11 = vweird.f32 %v3196_v63  ;;  %v1420_v4 = vpop.permute.xlu1 %1419 }
 0x388   : > { %1477 = vperm.xlu1 %2239, %v3229_v45   ;;  %v1357_v19 = vand.u32 2147483648, %v3187_v55  ;;  %v1344_v23 = vsel %vm1341_vm10, %v1343_v16, %v1339_v0  ;;  %vm1323_vm12 = vmor %vm1321_vm11, %vm1322_vm9  ;;  %v1328_v24 = vor.u32 1.1754944e-38, %v1327_v48  ;;  %v1365_v26 = vadd.f32 %v3211_v25, %v1364_v57 }
 0x389   : > { %v3270_v17 = vmul.f32 %v3194_v62, %v1285_v7  ;;  %v1320_v18 = vadd.f32 %v3217_v34, %v1319_v8  ;;  %vm1367_vm14 = vweird.f32 %v3211_v25  ;;  %vm1326_vm15 = vcmp.eq.f32.partialorder %v1325_v14, 8.507059e+37 }
 0x38a   : > { %vm1366_vm9 = vweird.f32 %v3190_v58  ;;  %v1370_v28 = vand.u32 2147483647, %v3190_v58  ;;  %v1372_v29 = vand.u32 2147483648, %v3190_v58  ;;  %v1354_v31 = vsel %vm3284_vm8, %v3207_v21, %v1350_v2 }
 0x38b   : > { %1474 = vperm.xlu0 %2238, %v3270_v17   ;;  %v1324_v62 = vsel %vm1323_vm12, %v3217_v34, %v1320_v18  ;;  %v1427_v27 = vpop.permute.xlu0 %1426  ;;  %v1379_v32 = vmul.f32 %v3227_v42, %v1378_v15  ;;  %v1345_v55 = vmul.f32 %v3138_v10, %v1344_v23  ;;  %v1358_v34 = vor.u32 1.1754944e-38, %v1357_v19  ;;  %vm1368_vm13 = vmor %vm1366_vm9, %vm1367_vm14 }
 0x38c   : > { %v1329_v30 = vsel %vm1326_vm15, %v1328_v24, %v1324_v62  ;;  %vm1356_vm0 = vcmp.eq.f32.partialorder %v1355_v20, 8.507059e+37  ;;  %v1369_v35 = vsel %vm1368_vm13, %v3211_v25, %v1365_v26  ;;  %v1373_v37 = vor.u32 1.1754944e-38, %v1372_v29 }
 0x38d   : > { %v1330_v33 = vmul.f32 %v3136_v9, %v1329_v30  ;;  %v1359_v58 = vsel %vm1356_vm0, %v1358_v34, %v1354_v31  ;;  %v1380_v38 = vadd.f32 %v3227_v42, %v1379_v32  ;;  %vm1382_vm8 = vweird.f32 %v3227_v42 }
 0x38e   : > { %v3304_v21 = vmul.f32 %v1427_v27, %v1345_v55  ;;  %vm1371_vm10 = vcmp.eq.f32.partialorder %v1370_v28, 8.507059e+37  ;;  %v1387_v9 = vand.u32 2147483648, %v3202_v5  ;;  %v1360_v39 = vmul.f32 %v3145_v13, %v1359_v58 }
 0x38f   : > { %v3300_v36 = vmul.f32 %v1420_v4, %v1330_v33  ;;  %v1374_v10 = vsel %vm1371_vm10, %v1373_v37, %v1369_v35  ;;  %vm1381_vm11 = vweird.f32 %v3202_v5  ;;  %v1385_v25 = vand.u32 2147483647, %v3202_v5  ;;  %v1434_v41 = vpop.permute.xlu1 %1433 }
 0x390   : > { %vm1383_vm12 = vmor %vm1381_vm11, %vm1382_vm8  ;;  %v1375_v43 = vmul.f32 %v3147_v11, %v1374_v10  ;;  %v1388_v46 = vor.u32 1.1754944e-38, %v1387_v9  ;;  %v3314_v47 = vmul.f32 %v1434_v41, %v1360_v39  ;;  %vm3621_vm15 = vcmask 64512  }
 0x391   : > { %1483 = vperm.xlu1 %2239, %v3300_v36   ;;  %v1384_v1 = vsel %vm1383_vm12, %v3227_v42, %v1380_v38  ;;  %vm1386_vm14 = vcmp.eq.f32.partialorder %v1385_v25, 8.507059e+37 }
 0x392   : > { %v1389_v49 = vsel %vm1386_vm14, %v1388_v46, %v1384_v1 }
 0x393   : > { %1486 = vperm.xlu0 %2238, %v3304_v21   ;;  %v1441_v3 = vpop.permute.xlu0 %1440  ;;  %v1390_v13 = vmul.f32 %v3141_v12, %v1389_v49 }
 0x394   : > { %v3316_v50 = vmul.f32 %v1441_v3, %v1375_v43 }
 0x397   : > { %v1448_v5 = vpop.permute.xlu1 %1447 }
 0x398   : > { %v3321_v51 = vmul.f32 %v1448_v5, %v1390_v13 }
 0x399   : > { %1489 = vperm.xlu1 %2239, %v3314_v47  }
 0x39b   : > { %1492 = vperm.xlu0 %2238, %v3316_v50  }
 0x3a1   : > { %1495 = vperm.xlu1 %2239, %v3321_v51  }
 0x3e1   : > { %v1481_v60 = vpop.permute.xlu2 %1480 }
 0x3e2   : > { %v1499_v61 = vperm.slane %v1481_v60, %v3106_v22 }
 0x3fa   : > { %v1478_v11 = vpop.permute.xlu1 %1477 }
 0x3fb   : > { %v1498_v56 = vperm.slane %v1478_v11, %v3106_v22 }
 0x3fd   : > { %v1475_v42 = vpop.permute.xlu0 %1474 }
 0x3fe   : > { %v1497_v59 = vperm.slane %v1475_v42, %v3106_v22 }
 0x400   : > { %v1505_v53 = vsel %vm1143_vm1, %v1498_v56, %v1497_v59 }
 0x401   : > { %v1506_v0 = vsel %vm1145_vm2, %v1499_v61, %v1505_v53 }
 0x403   : > { %v1484_v54 = vpop.permute.xlu1 %1483 }
 0x404   : > { %v1500_v12 = vperm.slane %v1484_v54, %v3106_v22 }
 0x405   : > { %v1487_v44 = vpop.permute.xlu0 %1486 }
 0x406   : > { %v1501_v57 = vperm.slane %v1487_v44, %v3106_v22  ;;  %v1507_v6 = vsel %vm1147_vm3, %v1500_v12, %v1506_v0 }
 0x408   : > { %v1508_v8 = vsel %vm1149_vm4, %v1501_v57, %v1507_v6 }
 0x40b   : > { %v1490_v52 = vpop.permute.xlu1 %1489 }
 0x40c   : > { %v1502_v48 = vperm.slane %v1490_v52, %v3106_v22 }
 0x40d   : > { %v1493_v7 = vpop.permute.xlu0 %1492 }
 0x40e   : > { %v1503_v14 = vperm.slane %v1493_v7, %v3106_v22  ;;  %v1509_v15 = vsel %vm1151_vm5, %v1502_v48, %v1508_v8 }
 0x410   : > { %v1510_v18 = vsel %vm1153_vm6, %v1503_v14, %v1509_v15 }
 0x413   : > { %v1496_v16 = vpop.permute.xlu1 %1495 }
 0x414   : > { %v1504_v2 = vperm.slane %v1496_v16, %v3106_v22 }
 0x416   : > { %v1511_v4 = vsel %vm3569_vm7, %v1504_v2, %v1510_v18 }
 0x417   : > { %v1513_v20 = vsel %vm3621_vm15, %v1511_v4, 0.0 }
 0x418   : > { %1514 = vadd.xlane.f32.xlu2 %v1513_v20 }
 0x48b   : > { %v1515_v19 = vpop.xlane.xlu2 %1514 }
 0x48c   : > { %v3340_v23 = vadd.f32 1e-05, %v1515_v19 }
 0x48e   : > { %v1519_v24 = vperm.slane %v3340_v23, 1  ;;  %v1518_v26 = vperm.slane %v3340_v23, 0  ;;  %v3345_v62 = vperm.slane %v3340_v23, 3  ;;  %v3348_v63 = vperm.slane %v3340_v23, 2 }
 0x48f   : > { %v3351_v27 = vperm.slane %v3340_v23, 5  ;;  %v3355_v28 = vperm.slane %v3340_v23, 4  ;;  %v3360_v55 = vperm.slane %v3340_v23, 7  ;;  %v3413_v20 = vperm.slane %v3340_v23, 6 }
 0x490   : > { %2290 = vrcp.f32 %v1519_v24  ;;  %v1558_v29 = vand.u32 2147483647, %v1519_v24  ;;  %v1560_v30 = vand.u32 2147483648, %v1519_v24  ;;  %v1543_v32 = vand.u32 2147483647, %v1518_v26 }
 0x491   : > { %2292 = vrcp.f32 %v1518_v26  ;;  %vm1554_vm9 = vweird.f32 %v1519_v24  ;;  %vm1539_vm13 = vweird.f32 %v1518_v26  ;;  %v1545_v37 = vand.u32 2147483648, %v1518_v26 }
 0x492   : > { %2294 = vrcp.f32 %v3345_v62  ;;  %vm3365_vm0 = vcmp.eq.f32.partialorder %v1558_v29, 8.507059e+37  ;;  %v1561_v10 = vor.u32 1.1754944e-38, %v1560_v30  ;;  %vm3371_vm8 = vcmp.eq.f32.partialorder %v1543_v32, 8.507059e+37 }
 0x493   : > { %2296 = vrcp.f32 %v3348_v63  ;;  %vm1584_vm10 = vweird.f32 %v3345_v62  ;;  %v1546_v5 = vor.u32 1.1754944e-38, %v1545_v37  ;;  %v1588_v56 = vand.u32 2147483647, %v3345_v62 }
 0x494   : > { %2298 = vrcp.f32 %v3351_v27  ;;  %v1590_v53 = vand.u32 2147483648, %v3345_v62  ;;  %v1575_v2 = vand.u32 2147483648, %v3348_v63  ;;  %v1605_v37 = vand.u32 2147483648, %v3355_v28 }
 0x495   : > { %2300 = vrcp.f32 %v3355_v28  ;;  %v1603_v9 = vand.u32 2147483647, %v3355_v28 }
 0x496   : > { %v2291_v31 = vpop.eup %2290  ;;  %2302 = vrcp.f32 %v3360_v55 }
 0x497   : > { %v2293_v33 = vpop.eup %2292  ;;  %v1550_v34 = vmul.f32 %v2291_v31, %v1519_v24  ;;  %vm1555_vm11 = vweird.f32 %v2291_v31  ;;  %2304 = vrcp.f32 %v3413_v20 }
 0x498   : > { %v3363_v35 = vpop.eup %2294  ;;  %v1535_v58 = vmul.f32 %v2293_v33, %v1518_v26  ;;  %vm1540_vm12 = vweird.f32 %v2293_v33  ;;  %vm1556_vm14 = vmor %vm1554_vm9, %vm1555_vm11  ;;  %v1591_v26 = vor.u32 1.1754944e-38, %v1590_v53 }
 0x499   : > { %v1551_v38 = vsub.f32 1.0, %v1550_v34  ;;  %v1580_v39 = vmul.f32 %v3363_v35, %v3345_v62  ;;  %v2297_v25 = vpop.eup %2296  ;;  %vm1585_vm15 = vweird.f32 %v3363_v35  ;;  %vm1541_vm7 = vmor %vm1539_vm13, %vm1540_vm12 }
 0x49a   : > { %v1536_v41 = vsub.f32 1.0, %v1535_v58  ;;  %v3377_v43 = vpop.eup %2298  ;;  %v1565_v49 = vmul.f32 %v2297_v25, %v3348_v63  ;;  %vm1570_vm9 = vweird.f32 %v2297_v25  ;;  %vm3406_vm13 = vmor %vm1584_vm10, %vm1585_vm15  ;;  %v1618_v58 = vand.u32 2147483647, %v3351_v27 }
 0x49b   : > { %v1552_v46 = vmul.f32 %v2291_v31, %v1551_v38  ;;  %v1581_v3 = vsub.f32 1.0, %v1580_v39  ;;  %v1610_v11 = vmul.f32 %v3377_v43, %v3351_v27  ;;  %v3382_v42 = vpop.eup %2300  ;;  %vm1615_vm11 = vweird.f32 %v3377_v43 }
 0x49c   : > { %v1537_v13 = vmul.f32 %v2293_v33, %v1536_v41  ;;  %v1566_v59 = vsub.f32 1.0, %v1565_v49  ;;  %v1595_v12 = vmul.f32 %v3382_v42, %v3355_v28  ;;  %v3393_v6 = vpop.eup %2302  ;;  %vm1600_vm12 = vweird.f32 %v3382_v42 }
 0x49d   : > { %v1553_v54 = vadd.f32 %v2291_v31, %v1552_v46  ;;  %v1582_v44 = vmul.f32 %v3363_v35, %v1581_v3  ;;  %v1611_v57 = vsub.f32 1.0, %v1610_v11  ;;  %v1640_v24 = vmul.f32 %v3393_v6, %v3360_v55 }
 0x49e   : > { %v1538_v60 = vadd.f32 %v2293_v33, %v1537_v13  ;;  %v1567_v0 = vmul.f32 %v2297_v25, %v1566_v59  ;;  %v1596_v8 = vsub.f32 1.0, %v1595_v12  ;;  %v1606_v41 = vor.u32 1.1754944e-38, %v1605_v37 }
 0x49f   : > { %v1557_v61 = vsel %vm1556_vm14, %v2291_v31, %v1553_v54  ;;  %v1583_v52 = vadd.f32 %v3363_v35, %v1582_v44  ;;  %v1612_v19 = vmul.f32 %v3377_v43, %v1611_v57  ;;  %v1641_v32 = vsub.f32 1.0, %v1640_v24 }
 0x4a0   : > { %v1562_v48 = vsel %vm3365_vm0, %v1561_v10, %v1557_v61  ;;  %v1542_v7 = vsel %vm1541_vm7, %v2293_v33, %v1538_v60  ;;  %v1568_v16 = vadd.f32 %v2297_v25, %v1567_v0  ;;  %vm1569_vm7 = vweird.f32 %v3348_v63 }
 0x4a1   : > { %v1563_v14 = vmul.f32 %v1562_v48, %v3229_v45  ;;  %v1547_v15 = vsel %vm3371_vm8, %v1546_v5, %v1542_v7  ;;  %v1573_v45 = vand.u32 2147483647, %v3348_v63  ;;  %vm1571_vm0 = vmor %vm1569_vm7, %vm1570_vm9  ;;  %v1597_v29 = vmul.f32 %v3382_v42, %v1596_v8 }
 0x4a2   : > { %v1548_v18 = vmul.f32 %v1547_v15, %v3270_v17  ;;  %v1587_v17 = vsel %vm3406_vm13, %v3363_v35, %v1583_v52  ;;  %v1572_v62 = vsel %vm1571_vm0, %v2297_v25, %v1568_v16  ;;  %vm1589_vm8 = vcmp.eq.f32.partialorder %v1588_v56, 8.507059e+37  ;;  %v2306_v52 = vld [vmem:[%s2983_s28 + $0x8] sm:$0xff] }
 0x4a3   : > { %1666 = vperm.xlu1 %2239, %v1563_v14   ;;  %v1576_v63 = vor.u32 1.1754944e-38, %v1575_v2  ;;  %v1592_v23 = vsel %vm1589_vm8, %v1591_v26, %v1587_v17  ;;  %vm1574_vm10 = vcmp.eq.f32.partialorder %v1573_v45, 8.507059e+37  ;;  %v1613_v31 = vadd.f32 %v3377_v43, %v1612_v19  ;;  %v2308_v2 = vld [vmem:[%s2983_s28 + $0x18] sm:$0xff]  ;;  %v2309_v45 = vld [vmem:[%s2983_s28 + $0x10] sm:$0xff] }
 0x4a4   : > { %1663 = vperm.xlu0 %2238, %v1548_v18   ;;  %v1620_v33 = vand.u32 2147483648, %v3351_v27  ;;  %v1598_v34 = vadd.f32 %v3382_v42, %v1597_v29  ;;  %v1593_v35 = vmul.f32 %v1592_v23, %v3300_v36  ;;  %vm1614_vm14 = vweird.f32 %v3351_v27  ;;  %v2305_v36 = vpop.eup %2304 }
 0x4a5   : > { %v1577_v30 = vsel %vm1574_vm10, %v1576_v63, %v1572_v62  ;;  %vm1616_vm15 = vmor %vm1614_vm14, %vm1615_vm11  ;;  %vm1599_vm9 = vweird.f32 %v3355_v28  ;;  %v1642_v39 = vmul.f32 %v3393_v6, %v1641_v32  ;;  %vm1619_vm7 = vcmp.eq.f32.partialorder %v1618_v58, 8.507059e+37 }
 0x4a6   : > { %v1578_v38 = vmul.f32 %v1577_v30, %v3223_v40  ;;  %v1617_v10 = vsel %vm1616_vm15, %v3377_v43, %v1613_v31  ;;  %vm1601_vm13 = vmor %vm1599_vm9, %vm1600_vm12  ;;  %v1621_v25 = vor.u32 1.1754944e-38, %v1620_v33  ;;  %v1625_v40 = vmul.f32 %v2305_v36, %v3413_v20 }
 0x4a7   : > { %v1602_v27 = vsel %vm1601_vm13, %v3382_v42, %v1598_v34  ;;  %vm1604_vm0 = vcmp.eq.f32.partialorder %v1603_v9, 8.507059e+37  ;;  %v1643_v28 = vadd.f32 %v3393_v6, %v1642_v39  ;;  %vm1645_vm8 = vweird.f32 %v3393_v6 }
 0x4a8   : > { %v1622_v1 = vsel %vm1619_vm7, %v1621_v25, %v1617_v10  ;;  %v1607_v46 = vsel %vm1604_vm0, %v1606_v41, %v1602_v27  ;;  %v1626_v43 = vsub.f32 1.0, %v1625_v40  ;;  %vm1644_vm10 = vweird.f32 %v3360_v55  ;;  %v2311_v10 = vld [vmem:[%s2983_s28 + $0x20] sm:$0xff] }
 0x4a9   : > { %v1648_v3 = vand.u32 2147483647, %v3360_v55  ;;  %v1650_v49 = vand.u32 2147483648, %v3360_v55  ;;  %v1623_v13 = vmul.f32 %v1622_v1, %v3314_v47  ;;  %vm1630_vm11 = vweird.f32 %v2305_v36  ;;  %vm1646_vm12 = vmor %vm1644_vm10, %vm1645_vm8 }
 0x4aa   : > { %v1627_v5 = vmul.f32 %v2305_v36, %v1626_v43  ;;  %v1635_v11 = vand.u32 2147483648, %v3413_v20  ;;  %v1608_v42 = vmul.f32 %v1607_v46, %v3304_v21  ;;  %v1633_v54 = vand.u32 2147483647, %v3413_v20 }
 0x4ab   : > { %1672 = vperm.xlu1 %2239, %v1593_v35   ;;  %v1647_v44 = vsel %vm1646_vm12, %v3393_v6, %v1643_v28  ;;  %vm1629_vm14 = vweird.f32 %v3413_v20  ;;  %v1651_v55 = vor.u32 1.1754944e-38, %v1650_v49  ;;  %vm1649_vm9 = vcmp.eq.f32.partialorder %v1648_v3, 8.507059e+37  ;;  %v2307_v6 = vld [vmem:[%s2983_s28] sm:$0xff]  ;;  %v2310_v35 = vld [vmem:[%s2983_s28 + $0x28] sm:$0xff] }
 0x4ac   : > { %1669 = vperm.xlu0 %2238, %v1578_v38   ;;  %v1628_v56 = vadd.f32 %v2305_v36, %v1627_v5  ;;  %vm1631_vm15 = vmor %vm1629_vm14, %vm1630_vm11  ;;  %v1636_v59 = vor.u32 1.1754944e-38, %v1635_v11  ;;  %vm1634_vm13 = vcmp.eq.f32.partialorder %v1633_v54, 8.507059e+37  ;;  %vm3628_vm7 = vcmask 261120  }
 0x4ad   : > { %v1652_v60 = vsel %vm1649_vm9, %v1651_v55, %v1647_v44  ;;  %vm3629_vm0 = vmmov %vm3628_vm7  ;;  %vm3637_vm9 = vcmask 1047559  }
 0x4ae   : > { %v1632_v47 = vsel %vm1631_vm15, %v2305_v36, %v1628_v56  ;;  %v1653_v53 = vmul.f32 %v1652_v60, %v3321_v51  ;;  %vm3630_vm8 = vmmov %vm3629_vm0 }
 0x4af   : > { %v1637_v21 = vsel %vm1634_vm13, %v1636_v59, %v1632_v47  ;;  %vm3631_vm10 = vmmov %vm3629_vm0  ;;  %vm3638_vm13 = vcmask 64512  }
 0x4b0   : > { %v1638_v12 = vmul.f32 %v1637_v21, %v3316_v50  ;;  %vm3632_vm11 = vmmov %vm3629_vm0 }
 0x4b1   : > { %vm3633_vm12 = vmmov %vm3629_vm0 }
 0x4b2   : > { %vm3634_vm14 = vmmov %vm3629_vm0 }
 0x4b3   : > { %1678 = vperm.xlu1 %2239, %v1623_v13   ;;  %vm3636_vm15 = vmmov %vm3629_vm0 }
 0x4b4   : > { %1675 = vperm.xlu0 %2238, %v1608_v42  }
 0x4bb   : > { %1684 = vperm.xlu1 %2239, %v1653_v53   ;;  %v2312_v53 = vld [vmem:[%s2983_s28 + $0x38] sm:$0xff] }
 0x4bc   : > { %1681 = vperm.xlu0 %2238, %v1638_v12  }
 0x515   : > { %v1667_v61 = vpop.permute.xlu1 %1666 }
 0x516   : > { %v1712_v0 = vmul.f32 %v2306_v52, %v1667_v61  ;;  %v1664_v57 = vpop.permute.xlu0 %1663  ;;  %v1687_v63 = vperm.slane %v1667_v61, %v3106_v22 }
 0x517   : > { %v1711_v48 = vmul.f32 %v2307_v6, %v1664_v57  ;;  %v1686_v23 = vperm.slane %v1664_v57, %v3106_v22  ;;  %v2313_v6 = vld [vmem:[%s2983_s28 + $0x30] sm:$0xff]  ;;  %s2105_s28 = sshll.u32 %s3606_s8, 3 }
 0x518   : > { %v1726_v7 = vsel %vm3628_vm7, %v1712_v0, 0.0  ;;  %s1810_s27 = scalar_lea.hbm %s3639_s1, %s2105_s28 }
 0x519   : > { %v1719_v8 = vsel %vm3629_vm0, %v1711_v48, 0.0  ;;  %v1727_v14 = vrot.slane %v1726_v7, 4  ;;  %v1694_v36 = vsel %vm1143_vm1, %v1687_v63, %v1686_v23  ;;  %s1814_s11 = sshll.u32 %s1810_s27, 4  ;;  %s1815_s11 = int_to_ptr.hbm [resolvable:$true] %s1814_s11 }
 0x51a   : > { %v1720_v15 = vrot.slane %v1719_v8, 4  ;;  %s2598_s26 = sshra.s32 %s1815_s11, 4  ;;  %s2599_s26 = int_to_ptr.hbm [resolvable:$true] %s2598_s26 }
 0x51b   : > { %v1728_v50 = vadd.f32 %v1727_v14, %v1726_v7  ;;  %s2600_s17 = scalar_lea.hbm %s2599_s26, 8  ;;  %p2605_p11 = scmp.lt.s32.totalorder %s2599_s26, %s3639_s1 }
 0x51c   : > { %v1721_v4 = vadd.f32 %v1720_v15, %v1719_v8  ;;  %p2601_p5 = scmp.ne.s32.totalorder %s2599_s26, %s2600_s17  ;;  %p2606_p2 = scmp.lt.s32.totalorder %s2604_s25, %s2600_s17 }
 0x51d   : > { %v1673_v16 = vpop.permute.xlu1 %1672  ;;  %v1729_v62 = vrot.slane %v1728_v50, 2 }
 0x51e   : > { %v1714_v51 = vmul.f32 %v2308_v2, %v1673_v16  ;;  %v1670_v18 = vpop.permute.xlu0 %1669  ;;  %v1722_v29 = vrot.slane %v1721_v4, 2  ;;  %v1689_v25 = vperm.slane %v1673_v16, %v3106_v22  ;;  %p2602_p7 = pnand %p2601_p5, %p2830_p3  ;;  %p2607_p10 = por %p2606_p2, %p2605_p11 }
 0x51f   : > { %v1713_v20 = vmul.f32 %v2309_v45, %v1670_v18  ;;  %v1688_v32 = vperm.slane %v1670_v18, %v3106_v22  ;;  %v1730_v38 = vadd.f32 %v1729_v62, %v1728_v50 }
 0x520   : > { %v1740_v17 = vsel %vm3630_vm8, %v1714_v51, 0.0  ;;  %v1723_v9 = vadd.f32 %v1722_v29, %v1721_v4  ;;  %p2603_p1 = pneg %p2602_p7 }
 0x521   : > { %v1741_v19 = vrot.slane %v1740_v17, 4  ;;  %v1733_v24 = vsel %vm3631_vm10, %v1713_v20, 0.0  ;;  %v1695_v40 = vsel %vm1145_vm2, %v1688_v32, %v1694_v36  ;;  %v1731_v49 = vrot.slane %v1730_v38, 1 }
 0x522   : > { %v1734_v26 = vrot.slane %v1733_v24, 4  ;;  %v1724_v13 = vrot.slane %v1723_v9, 1  ;;  %v1696_v54 = vsel %vm1147_vm3, %v1689_v25, %v1695_v40  ;;  %p2608_p13 = pnand %p2607_p10, %p2603_p1 }
 0x523   : > { %v1742_v30 = vadd.f32 %v1741_v19, %v1740_v17  ;;  %v1732_v52 = vadd.f32 %v1731_v49, %v1730_v38 }
 0x524   : > { %v1735_v31 = vadd.f32 %v1734_v26, %v1733_v24  ;;  %v1725_v0 = vadd.f32 %v1724_v13, %v1723_v9 }
 0x525   : > { %v1679_v33 = vpop.permute.xlu1 %1678  ;;  %v1743_v27 = vrot.slane %v1742_v30, 2 }
 0x526   : > { %v1736_v34 = vrot.slane %v1735_v31, 2  ;;  %v1716_v58 = vmul.f32 %v2310_v35, %v1679_v33  ;;  %v1676_v37 = vpop.permute.xlu0 %1675  ;;  %v1691_v42 = vperm.slane %v1679_v33, %v3106_v22  ;;  %v1783_v19 = vsel %vm1143_vm1, %v1732_v52, %v1725_v0  ;;  %vm3641_vm1 = vmmov %vm3637_vm9 }
 0x527   : > { %v1715_v39 = vmul.f32 %v2311_v10, %v1676_v37  ;;  %v1690_v46 = vperm.slane %v1676_v37, %v3106_v22  ;;  %v1744_v11 = vadd.f32 %v1743_v27, %v1742_v30 }
 0x528   : > { %v1754_v41 = vsel %vm3632_vm11, %v1716_v58, 0.0  ;;  %v1737_v43 = vadd.f32 %v1736_v34, %v1735_v31 }
 0x529   : > { %v1755_v1 = vrot.slane %v1754_v41, 4  ;;  %v1747_v28 = vsel %vm3633_vm12, %v1715_v39, 0.0  ;;  %v1697_v55 = vsel %vm1149_vm4, %v1690_v46, %v1696_v54  ;;  %v1745_v7 = vrot.slane %v1744_v11, 1 }
 0x52a   : > { %v1748_v3 = vrot.slane %v1747_v28, 4  ;;  %v1738_v59 = vrot.slane %v1737_v43, 1  ;;  %v1698_v15 = vsel %vm1151_vm5, %v1691_v42, %v1697_v55 }
 0x52b   : > { %v1756_v5 = vadd.f32 %v1755_v1, %v1754_v41  ;;  %v1746_v24 = vadd.f32 %v1745_v7, %v1744_v11 }
 0x52c   : > { %v1749_v44 = vadd.f32 %v1748_v3, %v1747_v28  ;;  %v1739_v18 = vadd.f32 %v1738_v59, %v1737_v43 }
 0x52d   : > { %v1757_v56 = vrot.slane %v1756_v5, 2  ;;  %v1685_v47 = vpop.permute.xlu1 %1684 }
 0x52e   : > { %v1750_v60 = vrot.slane %v1749_v44, 2  ;;  %v1693_v21 = vperm.slane %v1685_v47, %v3106_v22  ;;  %v1718_v12 = vmul.f32 %v2312_v53, %v1685_v47  ;;  %v1682_v61 = vpop.permute.xlu0 %1681  ;;  %v1784_v29 = vsel %vm1145_vm2, %v1739_v18, %v1783_v19  ;;  %vm3642_vm2 = vmmov %vm3629_vm0 }
 0x52f   : > { %v1692_v57 = vperm.slane %v1682_v61, %v3106_v22  ;;  %v1717_v48 = vmul.f32 %v2313_v6, %v1682_v61  ;;  %v1758_v16 = vadd.f32 %v1757_v56, %v1756_v5  ;;  %v1785_v33 = vsel %vm1147_vm3, %v1746_v24, %v1784_v29 }
 0x530   : > { %v1751_v8 = vadd.f32 %v1750_v60, %v1749_v44  ;;  %v1768_v14 = vsel %vm3634_vm14, %v1718_v12, 0.0 }
 0x531   : > { %v1769_v2 = vrot.slane %v1768_v14, 4  ;;  %v1699_v51 = vsel %vm1153_vm6, %v1692_v57, %v1698_v15  ;;  %v1761_v22 = vsel %vm3636_vm15, %v1717_v48, 0.0  ;;  %v1759_v26 = vrot.slane %v1758_v16, 1 }
 0x532   : > { %v1752_v50 = vrot.slane %v1751_v8, 1  ;;  %v1700_v4 = vsel %vm3637_vm9, %v1693_v21, %v1699_v51  ;;  %v1762_v45 = vrot.slane %v1761_v22, 4 }
 0x533   : > { %v1770_v20 = vadd.f32 %v1769_v2, %v1768_v14  ;;  %1702 = vst.msk [vmem:[%s740_s13] sm:$0xff] %vm3638_vm13, %v1700_v4  ;;  %v1760_v32 = vadd.f32 %v1759_v26, %v1758_v16 }
 0x534   : > { %v1763_v17 = vadd.f32 %v1762_v45, %v1761_v22  ;;  %v1753_v63 = vadd.f32 %v1752_v50, %v1751_v8 }
 0x535   : > { %v1771_v62 = vrot.slane %v1770_v20, 2 }
 0x536   : > { %v1764_v23 = vrot.slane %v1763_v17, 2  ;;  %v1786_v35 = vsel %vm1149_vm4, %v1753_v63, %v1785_v33 }
 0x537   : > { %v1772_v30 = vadd.f32 %v1771_v62, %v1770_v20  ;;  %v1787_v9 = vsel %vm1151_vm5, %v1760_v32, %v1786_v35 }
 0x538   : > { %v1765_v31 = vadd.f32 %v1764_v23, %v1763_v17 }
 0x539   : > { %v1773_v34 = vrot.slane %v1772_v30, 1 }
 0x53a   : > { %v1766_v58 = vrot.slane %v1765_v31, 1 }
 0x53b   : > { %v1774_v37 = vadd.f32 %v1773_v34, %v1772_v30 }
 0x53c   : > { %v1767_v38 = vadd.f32 %v1766_v58, %v1765_v31 }
 0x53e   : > { %v1788_v10 = vsel %vm1153_vm6, %v1767_v38, %v1787_v9 }
 0x53f   : > { %v1789_v39 = vsel %vm3641_vm1, %v1774_v37, %v1788_v10 }
 0x540   : > { %1791 = vst.msk [vmem:[%s729_s18] sm:$0xff] %vm3642_vm2, %v1789_v39 }
 0x541   : > { %2611 = shalt.err (!%p2608_p13)
}
 0x542   : > { %2149 = dma.vmem_to_hbm [thread:$0]  (%p2830_p3), %s1813_s5, 128, %s1815_s11, %s1797_s23  }
 0x543 PF: > { %s3643_s12 = sld [smem:[#allocation24_spill]]  ;;  %p3645_p8 = scmp.ge.s32.totalorder %s2666_s16, 2 }
 0x545   : > { %p2181_p9 = pnand %p3645_p8, %p2785_p6 }
 0x547   : > { %p2182_p12 = pneg %p2181_p9 }
 0x549   : > { %s1833_s20 = sand.u32 1, %s3643_s12  }
 0x54a   : > { %s1834_s21 = scalar_lea.sflag [#allocation4], %s1833_s20 }
 0x54b   : > { %2649 = dma.done.wait (%p2182_p12), %s1834_s21, 128  }
 0x54c   : > { %2651 = vsyncadd (%p2182_p12), %s1834_s21, 4294967168  ;;  %s3646_s16 = sld [smem:[#allocation30_spill]] }
 0x54d   : > { %s3647_s29 = sld [smem:[#allocation25_spill]] }
 0x54e   : > { %s3648_s30 = sld [smem:[#allocation26_spill]] }
 0x54f   : > { %s3649_s15 = sld [smem:[#allocation32_spill]] }
 0x552   : > { %p36_p0 = scmp.ge.s32.totalorder %s3646_s16, 4  }
 0x554   :  { %38 = sbr.rel (!%p36_p0) target bundleno = 22 (0x16), region = 196 }
 0x559   :  { %1840 = vsyncpa [#allocation3], 1 }
 0x55a   :  { %1842 = vsyncpa [#allocation3 + $0x1], 1 }
 0x55b   :  { %1843 = vsyncpa [#allocation6], 1 }
 0x55c   :  { %1845 = vsyncpa [#allocation6 + $0x1], 1 }
 0x55d   :  { %1846 = vsyncpa [#allocation9], 1 }
 0x55e   :  { %1848 = vsyncpa [#allocation9 + $0x1], 1 }
 0x55f   :  { %1849 = vsyncpa [#allocation12], 1 }
 0x560   :  { %1850 = vsyncpa [#allocation15], 1 }
 0x561   :  { %1851 = vsyncpa [#allocation4], 1 }
 0x562   :  { %1853 = vsyncpa [#allocation4 + $0x1], 1 }

</bundles_post_ra>
